<compile_context>
chip_gen: v7x
topology: tpu7x:2x2x1
jax: 0.10.0
libtpu: 0.0.40
codegen_flags: <defaults>
</compile_context>

<pallas_src>
import functools

import jax
import jax.numpy as jnp
from jax import lax
from jax.experimental import pallas as pl
from jax.experimental.pallas import tpu as pltpu


def _seq2seq_kernel(
    # inputs (all fully resident in VMEM)
    x2d_ref,       # (T*B, I)   time-major input, flattened over (T, B)
    wih_e_ref,     # (I, 4H)    encoder input weights,  gate order [i,f,o,g]
    whh_e_ref,     # (H, 4H)    encoder recurrent weights
    b_e_ref,       # (1, 4H)    encoder combined bias (b_ih + b_hh)
    wih_d_ref,     # (H, 4O)    decoder input weights
    whh_d_ref,     # (O, 4O)    decoder recurrent weights
    b_d_ref,       # (1, 4O)    decoder combined bias
    wlin_blk_ref,  # (T*O, T*O) block-diagonal kron(I_T, W_lin^T)
    blin_blk_ref,  # (1, T*O)   tiled linear bias
    # output: lane-dense slab
    y_ref,         # (B, T*O)
    *, T, B, H, O,
):
    # ---------------- one-time work, off the recurrent critical path -------
    # Hoisted encoder input projection + bias: a single (T*B, I) @ (I, 4H)
    # matmul amortizes MXU push/pop latency over all T steps.
    xproj = (jnp.dot(x2d_ref[...], wih_e_ref[...],
                     preferred_element_type=jnp.float32)
             + jnp.broadcast_to(b_e_ref[...], (T * B, 4 * H)))

    whh_e = whh_e_ref[...]
    wih_d = wih_d_ref[...]
    whh_d = whh_d_ref[...]
    # Hoist the bias broadcast out of the time loop (no CSE of broadcast).
    b_d = jnp.broadcast_to(b_d_ref[...], (B, 4 * O))

    def gates(pre, hid, c):
        # Gate order [i, f, o, g]: one contiguous sigmoid over 3*hid lanes and
        # one tanh over hid lanes -> 2 EUP pushes / 2 lane slices per cell.
        sig = jax.nn.sigmoid(pre[:, 0:3 * hid])
        g = jnp.tanh(pre[:, 3 * hid:4 * hid])
        i = sig[:, 0 * hid:1 * hid]
        f = sig[:, 1 * hid:2 * hid]
        o = sig[:, 2 * hid:3 * hid]
        c_new = f * c + i * g
        h_new = o * jnp.tanh(c_new)
        return h_new, c_new

    # LSTM carries live in vregs across the fully unrolled time loop.
    h_e = jnp.zeros((B, H), jnp.float32)
    c_e = jnp.zeros((B, H), jnp.float32)
    h_d = jnp.zeros((B, O), jnp.float32)
    c_d = jnp.zeros((B, O), jnp.float32)

    hds = []
    # T is static and small; a Python loop gives the scheduler full visibility
    # and keeps every slice static (per-step xproj slices are 8-sublane
    # aligned because B is padded to a multiple of 8).
    for t in range(T):
        # Encoder step: only the recurrent matmul sits on the serial chain.
        pre_e = xproj[t * B:(t + 1) * B, :] + jnp.dot(
            h_e, whh_e, preferred_element_type=jnp.float32)
        h_e, c_e = gates(pre_e, H, c_e)

        # Decoder step: two small matmuls, no lane concat.
        pre_d = (jnp.dot(h_e, wih_d, preferred_element_type=jnp.float32)
                 + jnp.dot(h_d, whh_d, preferred_element_type=jnp.float32)
                 + b_d)
        h_d, c_d = gates(pre_d, O, c_d)
        hds.append(h_d)

    # ---------------- batched epilogue (single matmul + single store) ------
    hd_lane = jnp.concatenate(hds, axis=1)                       # (B, T*O)
    y_slab = (jnp.dot(hd_lane, wlin_blk_ref[...],
                      preferred_element_type=jnp.float32)
              + jnp.broadcast_to(blin_blk_ref[...], (B, T * O)))
    # One unmasked, lane-dense (B, T*O = 128) store.
    y_ref[...] = y_slab.astype(y_ref.dtype)


def seq2seq_forward(x, kernel_params):
    """x: (T, B, input_size) float32 -> (T, B, output_size) float32."""
    T, B, I = x.shape
    wih_e, whh_e, b_e, wih_d, whh_d, b_d, w_lin, b_lin = kernel_params
    H = whh_e.shape[0]
    O = whh_d.shape[0]

    # Pad batch to a multiple of 8 sublanes so the vreg layout (and all
    # per-step sublane slices of the hoisted projection) is deliberate.
    Bp = max(8, -(-B // 8) * 8)
    if Bp != B:
        x = jnp.pad(x, ((0, 0), (0, Bp - B), (0, 0)))
    x2d = x.reshape(T * Bp, I)           # flatten (T, B) in the wrapper (free)

    # Block-diagonal linear weight: one lane-dense epilogue matmul replaces T
    # tiny per-step matmuls; bias tiled to match.
    wlin_blk = jnp.kron(jnp.eye(T, dtype=w_lin.dtype), w_lin)    # (T*O, T*O)
    blin_blk = jnp.tile(b_lin, (1, T))                           # (1, T*O)

    kernel = functools.partial(_seq2seq_kernel, T=T, B=Bp, H=H, O=O)
    full = lambda a: pl.BlockSpec(a.shape, lambda i: (0,) * a.ndim)

    # NOTE: at real batches >= 16 on v7x, a leading batch grid axis marked
    # "parallel" would shard the recurrence across both TensorCores; at the
    # test batch (B=2 -> Bp=8) a single invocation is optimal everywhere.
    y_slab = pl.pallas_call(
        kernel,
        out_shape=jax.ShapeDtypeStruct((Bp, T * O), jnp.float32),
        grid_spec=pltpu.PrefetchScalarGridSpec(
            num_scalar_prefetch=0,
            grid=(1,),  # single invocation: whole recurrence fused in-kernel
            in_specs=[
                full(x2d),
                full(wih_e), full(whh_e), full(b_e),
                full(wih_d), full(whh_d), full(b_d),
                full(wlin_blk), full(blin_blk),
            ],
            out_specs=pl.BlockSpec((Bp, T * O), lambda i: (0, 0)),
        ),
        compiler_params=pltpu.CompilerParams(
            dimension_semantics=("arbitrary",),
            vmem_limit_bytes=32 * 1024 * 1024,
        ),
    )(x2d, wih_e, whh_e, b_e, wih_d, whh_d, b_d, wlin_blk, blin_blk)

    # Un-slab: (Bp, T*O) -> (T, B, O). Kept here (not in-kernel) so the kernel
    # store stays a single dense vreg-wide write; negligible at these shapes.
    return jnp.transpose(y_slab[:B].reshape(B, T, O), (1, 0, 2))


# ----------------------------- parameters ----------------------------------


def make_torch_params(key, input_size, hidden_size, output_size):
    """Deterministic synthetic parameters in native PyTorch layout / gate
    order [i, f, g, o]. These are the ground truth for the reference."""
    ks = jax.random.split(key, 10)
    s = 0.1
    n = lambda k, shape: jax.random.normal(k, shape, jnp.float32) * s
    return dict(
        w_ih_enc=n(ks[0], (4 * hidden_size, input_size)),
        w_hh_enc=n(ks[1], (4 * hidden_size, hidden_size)),
        b_ih_enc=n(ks[2], (4 * hidden_size,)),
        b_hh_enc=n(ks[3], (4 * hidden_size,)),
        w_ih_dec=n(ks[4], (4 * output_size, hidden_size)),
        w_hh_dec=n(ks[5], (4 * output_size, output_size)),
        b_ih_dec=n(ks[6], (4 * output_size,)),
        b_hh_dec=n(ks[7], (4 * output_size,)),
        w_lin=n(ks[8], (output_size, output_size)),
        b_lin=n(ks[9], (output_size,)),
    )


def _reorder_ifgo_to_ifog(a, axis=0):
    """PyTorch gate order [i, f, g, o] -> kernel order [i, f, o, g]."""
    i, f, g, o = jnp.split(a, 4, axis=axis)
    return jnp.concatenate([i, f, o, g], axis=axis)


def to_kernel_params(tp):
    """Transpose, reorder gates, and combine biases for the kernel layout."""
    wih_e = _reorder_ifgo_to_ifog(tp["w_ih_enc"]).T            # (I, 4H)
    whh_e = _reorder_ifgo_to_ifog(tp["w_hh_enc"]).T            # (H, 4H)
    b_e = _reorder_ifgo_to_ifog(tp["b_ih_enc"] + tp["b_hh_enc"]).reshape(1, -1)
    wih_d = _reorder_ifgo_to_ifog(tp["w_ih_dec"]).T            # (H, 4O)
    whh_d = _reorder_ifgo_to_ifog(tp["w_hh_dec"]).T            # (O, 4O)
    b_d = _reorder_ifgo_to_ifog(tp["b_ih_dec"] + tp["b_hh_dec"]).reshape(1, -1)
    w_lin = tp["w_lin"].T                                      # (O, O)
    b_lin = tp["b_lin"].reshape(1, -1)                         # (1, O)
    return (wih_e, whh_e, b_e, wih_d, whh_d, b_d, w_lin, b_lin)


# ----------------------------- reference ------------------------------------


def reference_forward(x, tp):
    """Pure-JAX reference in native PyTorch layout and gate order [i,f,g,o],
    so any gate-reorder mistake in to_kernel_params shows up as a mismatch."""
    T, B, I = x.shape
    H = tp["w_hh_enc"].shape[1]
    O = tp["w_hh_dec"].shape[1]

    def make_cell(w_ih, w_hh, b_ih, b_hh, hid):
        def cell(carry, x_t):
            h, c = carry
            g = x_t @ w_ih.T + b_ih + h @ w_hh.T + b_hh
            i = jax.nn.sigmoid(g[:, :hid])
            f = jax.nn.sigmoid(g[:, hid:2 * hid])
            gg = jnp.tanh(g[:, 2 * hid:3 * hid])
            o = jax.nn.sigmoid(g[:, 3 * hid:])
            c_new = f * c + i * gg
            h_new = o * jnp.tanh(c_new)
            return (h_new, c_new), h_new
        return cell

    z = lambda n: jnp.zeros((B, n), jnp.float32)
    _, enc = lax.scan(
        make_cell(tp["w_ih_enc"], tp["w_hh_enc"],
                  tp["b_ih_enc"], tp["b_hh_enc"], H),
        (z(H), z(H)), x)
    _, dec = lax.scan(
        make_cell(tp["w_ih_dec"], tp["w_hh_dec"],
                  tp["b_ih_dec"], tp["b_hh_dec"], O),
        (z(O), z(O)), enc)
    return dec @ tp["w_lin"].T + tp["b_lin"]


if __name__ == "__main__":
    T, B = 8, 2
    input_size, hidden_size, output_size = 16, 32, 16

    key = jax.random.PRNGKey(0)
    k_x, k_p = jax.random.split(key)
    x = jax.random.normal(k_x, (T, B, input_size), jnp.float32)

    torch_params = make_torch_params(k_p, input_size, hidden_size, output_size)
    kernel_params = to_kernel_params(torch_params)

    y = seq2seq_forward(x, kernel_params)
    y = jax.block_until_ready(y)

    y_ref = reference_forward(x, torch_params)
    assert y.shape == (T, B, output_size)
    assert jnp.allclose(y, y_ref, rtol=1e-4, atol=1e-4), "mismatch vs JAX reference"

    print("KERNEL_OK")
</pallas_src>

<mosaic_0001>
module attributes {stable_mosaic.version = 11 : i64} {
  func.func @_seq2seq_kernel(%arg0: i32, %arg1: memref<64x16xf32, #tpu.memory_space<vmem>>, %arg2: memref<16x128xf32, #tpu.memory_space<vmem>>, %arg3: memref<32x128xf32, #tpu.memory_space<vmem>>, %arg4: memref<1x128xf32, #tpu.memory_space<vmem>>, %arg5: memref<32x64xf32, #tpu.memory_space<vmem>>, %arg6: memref<16x64xf32, #tpu.memory_space<vmem>>, %arg7: memref<1x64xf32, #tpu.memory_space<vmem>>, %arg8: memref<128x128xf32, #tpu.memory_space<vmem>>, %arg9: memref<1x128xf32, #tpu.memory_space<vmem>>, %arg10: memref<8x128xf32, #tpu.memory_space<vmem>>) attributes {dimension_semantics = [#tpu.dimension_semantics<arbitrary>], iteration_bounds = array<i64: 1>, scalar_prefetch = 0 : i64, scratch_operands = 0 : i64, tpu.core_type = #tpu.core_type<tc>, window_params = [{pipeline_mode = #tpu.pipeline_mode<synchronous>, transform_indices = @transform_0, window_bounds = array<i64: 64, 16>}, {pipeline_mode = #tpu.pipeline_mode<synchronous>, transform_indices = @transform_1, window_bounds = array<i64: 16, 128>}, {pipeline_mode = #tpu.pipeline_mode<synchronous>, transform_indices = @transform_2, window_bounds = array<i64: 32, 128>}, {pipeline_mode = #tpu.pipeline_mode<synchronous>, transform_indices = @transform_3, window_bounds = array<i64: 1, 128>}, {pipeline_mode = #tpu.pipeline_mode<synchronous>, transform_indices = @transform_4, window_bounds = array<i64: 32, 64>}, {pipeline_mode = #tpu.pipeline_mode<synchronous>, transform_indices = @transform_5, window_bounds = array<i64: 16, 64>}, {pipeline_mode = #tpu.pipeline_mode<synchronous>, transform_indices = @transform_6, window_bounds = array<i64: 1, 64>}, {pipeline_mode = #tpu.pipeline_mode<synchronous>, transform_indices = @transform_7, window_bounds = array<i64: 128, 128>}, {pipeline_mode = #tpu.pipeline_mode<synchronous>, transform_indices = @transform_8, window_bounds = array<i64: 1, 128>}, {pipeline_mode = #tpu.pipeline_mode<synchronous>, transform_indices = @transform_9, window_bounds = array<i64: 8, 128>}]} {
    %c0 = arith.constant 0 : index
    %c0_0 = arith.constant 0 : index
    %0 = vector.load %arg1[%c0, %c0_0] : memref<64x16xf32, #tpu.memory_space<vmem>>, vector<64x16xf32>
    %c0_1 = arith.constant 0 : index
    %c0_2 = arith.constant 0 : index
    %1 = vector.load %arg2[%c0_1, %c0_2] : memref<16x128xf32, #tpu.memory_space<vmem>>, vector<16x128xf32>
    %cst = arith.constant dense<0.000000e+00> : vector<64x128xf32>
    %2 = tpu.matmul %0, %1, %cst {dimension_numbers = #tpu.dot_dimension_numbers<[1], [0], [0], [1], [0, 0, 1, 1], [], []>} : vector<64x16xf32>, vector<16x128xf32>, vector<64x128xf32> -> vector<64x128xf32>
    %c0_3 = arith.constant 0 : index
    %c0_4 = arith.constant 0 : index
    %3 = vector.load %arg4[%c0_3, %c0_4] : memref<1x128xf32, #tpu.memory_space<vmem>>, vector<1x128xf32>
    %4 = vector.shape_cast %3 : vector<1x128xf32> to vector<1x128xf32>
    %5 = vector.broadcast %4 : vector<1x128xf32> to vector<64x128xf32>
    %6 = arith.addf %2, %5 : vector<64x128xf32>
    %c0_5 = arith.constant 0 : index
    %c0_6 = arith.constant 0 : index
    %7 = vector.load %arg3[%c0_5, %c0_6] : memref<32x128xf32, #tpu.memory_space<vmem>>, vector<32x128xf32>
    %c0_7 = arith.constant 0 : index
    %c0_8 = arith.constant 0 : index
    %8 = vector.load %arg5[%c0_7, %c0_8] : memref<32x64xf32, #tpu.memory_space<vmem>>, vector<32x64xf32>
    %c0_9 = arith.constant 0 : index
    %c0_10 = arith.constant 0 : index
    %9 = vector.load %arg6[%c0_9, %c0_10] : memref<16x64xf32, #tpu.memory_space<vmem>>, vector<16x64xf32>
    %c0_11 = arith.constant 0 : index
    %c0_12 = arith.constant 0 : index
    %10 = vector.load %arg7[%c0_11, %c0_12] : memref<1x64xf32, #tpu.memory_space<vmem>>, vector<1x64xf32>
    %11 = vector.shape_cast %10 : vector<1x64xf32> to vector<1x64xf32>
    %12 = vector.broadcast %11 : vector<1x64xf32> to vector<8x64xf32>
    %cst_13 = arith.constant 0.000000e+00 : f32
    %13 = vector.broadcast %cst_13 : f32 to vector<8x32xf32>
    %cst_14 = arith.constant 0.000000e+00 : f32
    %14 = vector.broadcast %cst_14 : f32 to vector<8x32xf32>
    %cst_15 = arith.constant 0.000000e+00 : f32
    %15 = vector.broadcast %cst_15 : f32 to vector<8x16xf32>
    %cst_16 = arith.constant 0.000000e+00 : f32
    %16 = vector.broadcast %cst_16 : f32 to vector<8x16xf32>
    %17 = vector.extract_strided_slice %6 {offsets = [0, 0], sizes = [8, 128], strides = [1, 1]} : vector<64x128xf32> to vector<8x128xf32>
    %cst_17 = arith.constant dense<0.000000e+00> : vector<8x128xf32>
    %18 = tpu.matmul %13, %7, %cst_17 {dimension_numbers = #tpu.dot_dimension_numbers<[1], [0], [0], [1], [0, 0, 1, 1], [], []>} : vector<8x32xf32>, vector<32x128xf32>, vector<8x128xf32> -> vector<8x128xf32>
    %19 = arith.addf %17, %18 : vector<8x128xf32>
    %20 = vector.extract_strided_slice %19 {offsets = [0, 0], sizes = [8, 96], strides = [1, 1]} : vector<8x128xf32> to vector<8x96xf32>
    %21 = arith.negf %20 : vector<8x96xf32>
    %22 = math.exp %21 : vector<8x96xf32>
    %cst_18 = arith.constant 1.000000e+00 : f32
    %23 = vector.broadcast %cst_18 : f32 to vector<8x96xf32>
    %24 = arith.addf %23, %22 : vector<8x96xf32>
    %25 = arith.divf %23, %24 : vector<8x96xf32>
    %26 = vector.extract_strided_slice %19 {offsets = [0, 96], sizes = [8, 32], strides = [1, 1]} : vector<8x128xf32> to vector<8x32xf32>
    %27 = math.tanh %26 : vector<8x32xf32>
    %28 = vector.extract_strided_slice %25 {offsets = [0, 0], sizes = [8, 32], strides = [1, 1]} : vector<8x96xf32> to vector<8x32xf32>
    %29 = vector.extract_strided_slice %25 {offsets = [0, 32], sizes = [8, 32], strides = [1, 1]} : vector<8x96xf32> to vector<8x32xf32>
    %30 = vector.extract_strided_slice %25 {offsets = [0, 64], sizes = [8, 32], strides = [1, 1]} : vector<8x96xf32> to vector<8x32xf32>
    %31 = arith.mulf %29, %14 : vector<8x32xf32>
    %32 = arith.mulf %28, %27 : vector<8x32xf32>
    %33 = arith.addf %31, %32 : vector<8x32xf32>
    %34 = math.tanh %33 : vector<8x32xf32>
    %35 = arith.mulf %30, %34 : vector<8x32xf32>
    %cst_19 = arith.constant dense<0.000000e+00> : vector<8x64xf32>
    %36 = tpu.matmul %35, %8, %cst_19 {dimension_numbers = #tpu.dot_dimension_numbers<[1], [0], [0], [1], [0, 0, 1, 1], [], []>} : vector<8x32xf32>, vector<32x64xf32>, vector<8x64xf32> -> vector<8x64xf32>
    %cst_20 = arith.constant dense<0.000000e+00> : vector<8x64xf32>
    %37 = tpu.matmul %15, %9, %cst_20 {dimension_numbers = #tpu.dot_dimension_numbers<[1], [0], [0], [1], [0, 0, 1, 1], [], []>} : vector<8x16xf32>, vector<16x64xf32>, vector<8x64xf32> -> vector<8x64xf32>
    %38 = arith.addf %36, %37 : vector<8x64xf32>
    %39 = arith.addf %38, %12 : vector<8x64xf32>
    %40 = vector.extract_strided_slice %39 {offsets = [0, 0], sizes = [8, 48], strides = [1, 1]} : vector<8x64xf32> to vector<8x48xf32>
    %41 = arith.negf %40 : vector<8x48xf32>
    %42 = math.exp %41 : vector<8x48xf32>
    %cst_21 = arith.constant 1.000000e+00 : f32
    %43 = vector.broadcast %cst_21 : f32 to vector<8x48xf32>
    %44 = arith.addf %43, %42 : vector<8x48xf32>
    %45 = arith.divf %43, %44 : vector<8x48xf32>
    %46 = vector.extract_strided_slice %39 {offsets = [0, 48], sizes = [8, 16], strides = [1, 1]} : vector<8x64xf32> to vector<8x16xf32>
    %47 = math.tanh %46 : vector<8x16xf32>
    %48 = vector.extract_strided_slice %45 {offsets = [0, 0], sizes = [8, 16], strides = [1, 1]} : vector<8x48xf32> to vector<8x16xf32>
    %49 = vector.extract_strided_slice %45 {offsets = [0, 16], sizes = [8, 16], strides = [1, 1]} : vector<8x48xf32> to vector<8x16xf32>
    %50 = vector.extract_strided_slice %45 {offsets = [0, 32], sizes = [8, 16], strides = [1, 1]} : vector<8x48xf32> to vector<8x16xf32>
    %51 = arith.mulf %49, %16 : vector<8x16xf32>
    %52 = arith.mulf %48, %47 : vector<8x16xf32>
    %53 = arith.addf %51, %52 : vector<8x16xf32>
    %54 = math.tanh %53 : vector<8x16xf32>
    %55 = arith.mulf %50, %54 : vector<8x16xf32>
    %56 = vector.extract_strided_slice %6 {offsets = [8, 0], sizes = [8, 128], strides = [1, 1]} : vector<64x128xf32> to vector<8x128xf32>
    %cst_22 = arith.constant dense<0.000000e+00> : vector<8x128xf32>
    %57 = tpu.matmul %35, %7, %cst_22 {dimension_numbers = #tpu.dot_dimension_numbers<[1], [0], [0], [1], [0, 0, 1, 1], [], []>} : vector<8x32xf32>, vector<32x128xf32>, vector<8x128xf32> -> vector<8x128xf32>
    %58 = arith.addf %56, %57 : vector<8x128xf32>
    %59 = vector.extract_strided_slice %58 {offsets = [0, 0], sizes = [8, 96], strides = [1, 1]} : vector<8x128xf32> to vector<8x96xf32>
    %60 = arith.negf %59 : vector<8x96xf32>
    %61 = math.exp %60 : vector<8x96xf32>
    %cst_23 = arith.constant 1.000000e+00 : f32
    %62 = vector.broadcast %cst_23 : f32 to vector<8x96xf32>
    %63 = arith.addf %62, %61 : vector<8x96xf32>
    %64 = arith.divf %62, %63 : vector<8x96xf32>
    %65 = vector.extract_strided_slice %58 {offsets = [0, 96], sizes = [8, 32], strides = [1, 1]} : vector<8x128xf32> to vector<8x32xf32>
    %66 = math.tanh %65 : vector<8x32xf32>
    %67 = vector.extract_strided_slice %64 {offsets = [0, 0], sizes = [8, 32], strides = [1, 1]} : vector<8x96xf32> to vector<8x32xf32>
    %68 = vector.extract_strided_slice %64 {offsets = [0, 32], sizes = [8, 32], strides = [1, 1]} : vector<8x96xf32> to vector<8x32xf32>
    %69 = vector.extract_strided_slice %64 {offsets = [0, 64], sizes = [8, 32], strides = [1, 1]} : vector<8x96xf32> to vector<8x32xf32>
    %70 = arith.mulf %68, %33 : vector<8x32xf32>
    %71 = arith.mulf %67, %66 : vector<8x32xf32>
    %72 = arith.addf %70, %71 : vector<8x32xf32>
    %73 = math.tanh %72 : vector<8x32xf32>
    %74 = arith.mulf %69, %73 : vector<8x32xf32>
    %cst_24 = arith.constant dense<0.000000e+00> : vector<8x64xf32>
    %75 = tpu.matmul %74, %8, %cst_24 {dimension_numbers = #tpu.dot_dimension_numbers<[1], [0], [0], [1], [0, 0, 1, 1], [], []>} : vector<8x32xf32>, vector<32x64xf32>, vector<8x64xf32> -> vector<8x64xf32>
    %cst_25 = arith.constant dense<0.000000e+00> : vector<8x64xf32>
    %76 = tpu.matmul %55, %9, %cst_25 {dimension_numbers = #tpu.dot_dimension_numbers<[1], [0], [0], [1], [0, 0, 1, 1], [], []>} : vector<8x16xf32>, vector<16x64xf32>, vector<8x64xf32> -> vector<8x64xf32>
    %77 = arith.addf %75, %76 : vector<8x64xf32>
    %78 = arith.addf %77, %12 : vector<8x64xf32>
    %79 = vector.extract_strided_slice %78 {offsets = [0, 0], sizes = [8, 48], strides = [1, 1]} : vector<8x64xf32> to vector<8x48xf32>
    %80 = arith.negf %79 : vector<8x48xf32>
    %81 = math.exp %80 : vector<8x48xf32>
    %cst_26 = arith.constant 1.000000e+00 : f32
    %82 = vector.broadcast %cst_26 : f32 to vector<8x48xf32>
    %83 = arith.addf %82, %81 : vector<8x48xf32>
    %84 = arith.divf %82, %83 : vector<8x48xf32>
    %85 = vector.extract_strided_slice %78 {offsets = [0, 48], sizes = [8, 16], strides = [1, 1]} : vector<8x64xf32> to vector<8x16xf32>
    %86 = math.tanh %85 : vector<8x16xf32>
    %87 = vector.extract_strided_slice %84 {offsets = [0, 0], sizes = [8, 16], strides = [1, 1]} : vector<8x48xf32> to vector<8x16xf32>
    %88 = vector.extract_strided_slice %84 {offsets = [0, 16], sizes = [8, 16], strides = [1, 1]} : vector<8x48xf32> to vector<8x16xf32>
    %89 = vector.extract_strided_slice %84 {offsets = [0, 32], sizes = [8, 16], strides = [1, 1]} : vector<8x48xf32> to vector<8x16xf32>
    %90 = arith.mulf %88, %53 : vector<8x16xf32>
    %91 = arith.mulf %87, %86 : vector<8x16xf32>
    %92 = arith.addf %90, %91 : vector<8x16xf32>
    %93 = math.tanh %92 : vector<8x16xf32>
    %94 = arith.mulf %89, %93 : vector<8x16xf32>
    %95 = vector.extract_strided_slice %6 {offsets = [16, 0], sizes = [8, 128], strides = [1, 1]} : vector<64x128xf32> to vector<8x128xf32>
    %cst_27 = arith.constant dense<0.000000e+00> : vector<8x128xf32>
    %96 = tpu.matmul %74, %7, %cst_27 {dimension_numbers = #tpu.dot_dimension_numbers<[1], [0], [0], [1], [0, 0, 1, 1], [], []>} : vector<8x32xf32>, vector<32x128xf32>, vector<8x128xf32> -> vector<8x128xf32>
    %97 = arith.addf %95, %96 : vector<8x128xf32>
    %98 = vector.extract_strided_slice %97 {offsets = [0, 0], sizes = [8, 96], strides = [1, 1]} : vector<8x128xf32> to vector<8x96xf32>
    %99 = arith.negf %98 : vector<8x96xf32>
    %100 = math.exp %99 : vector<8x96xf32>
    %cst_28 = arith.constant 1.000000e+00 : f32
    %101 = vector.broadcast %cst_28 : f32 to vector<8x96xf32>
    %102 = arith.addf %101, %100 : vector<8x96xf32>
    %103 = arith.divf %101, %102 : vector<8x96xf32>
    %104 = vector.extract_strided_slice %97 {offsets = [0, 96], sizes = [8, 32], strides = [1, 1]} : vector<8x128xf32> to vector<8x32xf32>
    %105 = math.tanh %104 : vector<8x32xf32>
    %106 = vector.extract_strided_slice %103 {offsets = [0, 0], sizes = [8, 32], strides = [1, 1]} : vector<8x96xf32> to vector<8x32xf32>
    %107 = vector.extract_strided_slice %103 {offsets = [0, 32], sizes = [8, 32], strides = [1, 1]} : vector<8x96xf32> to vector<8x32xf32>
    %108 = vector.extract_strided_slice %103 {offsets = [0, 64], sizes = [8, 32], strides = [1, 1]} : vector<8x96xf32> to vector<8x32xf32>
    %109 = arith.mulf %107, %72 : vector<8x32xf32>
    %110 = arith.mulf %106, %105 : vector<8x32xf32>
    %111 = arith.addf %109, %110 : vector<8x32xf32>
    %112 = math.tanh %111 : vector<8x32xf32>
    %113 = arith.mulf %108, %112 : vector<8x32xf32>
    %cst_29 = arith.constant dense<0.000000e+00> : vector<8x64xf32>
    %114 = tpu.matmul %113, %8, %cst_29 {dimension_numbers = #tpu.dot_dimension_numbers<[1], [0], [0], [1], [0, 0, 1, 1], [], []>} : vector<8x32xf32>, vector<32x64xf32>, vector<8x64xf32> -> vector<8x64xf32>
    %cst_30 = arith.constant dense<0.000000e+00> : vector<8x64xf32>
    %115 = tpu.matmul %94, %9, %cst_30 {dimension_numbers = #tpu.dot_dimension_numbers<[1], [0], [0], [1], [0, 0, 1, 1], [], []>} : vector<8x16xf32>, vector<16x64xf32>, vector<8x64xf32> -> vector<8x64xf32>
    %116 = arith.addf %114, %115 : vector<8x64xf32>
    %117 = arith.addf %116, %12 : vector<8x64xf32>
    %118 = vector.extract_strided_slice %117 {offsets = [0, 0], sizes = [8, 48], strides = [1, 1]} : vector<8x64xf32> to vector<8x48xf32>
    %119 = arith.negf %118 : vector<8x48xf32>
    %120 = math.exp %119 : vector<8x48xf32>
    %cst_31 = arith.constant 1.000000e+00 : f32
    %121 = vector.broadcast %cst_31 : f32 to vector<8x48xf32>
    %122 = arith.addf %121, %120 : vector<8x48xf32>
    %123 = arith.divf %121, %122 : vector<8x48xf32>
    %124 = vector.extract_strided_slice %117 {offsets = [0, 48], sizes = [8, 16], strides = [1, 1]} : vector<8x64xf32> to vector<8x16xf32>
    %125 = math.tanh %124 : vector<8x16xf32>
    %126 = vector.extract_strided_slice %123 {offsets = [0, 0], sizes = [8, 16], strides = [1, 1]} : vector<8x48xf32> to vector<8x16xf32>
    %127 = vector.extract_strided_slice %123 {offsets = [0, 16], sizes = [8, 16], strides = [1, 1]} : vector<8x48xf32> to vector<8x16xf32>
    %128 = vector.extract_strided_slice %123 {offsets = [0, 32], sizes = [8, 16], strides = [1, 1]} : vector<8x48xf32> to vector<8x16xf32>
    %129 = arith.mulf %127, %92 : vector<8x16xf32>
    %130 = arith.mulf %126, %125 : vector<8x16xf32>
    %131 = arith.addf %129, %130 : vector<8x16xf32>
    %132 = math.tanh %131 : vector<8x16xf32>
    %133 = arith.mulf %128, %132 : vector<8x16xf32>
    %134 = vector.extract_strided_slice %6 {offsets = [24, 0], sizes = [8, 128], strides = [1, 1]} : vector<64x128xf32> to vector<8x128xf32>
    %cst_32 = arith.constant dense<0.000000e+00> : vector<8x128xf32>
    %135 = tpu.matmul %113, %7, %cst_32 {dimension_numbers = #tpu.dot_dimension_numbers<[1], [0], [0], [1], [0, 0, 1, 1], [], []>} : vector<8x32xf32>, vector<32x128xf32>, vector<8x128xf32> -> vector<8x128xf32>
    %136 = arith.addf %134, %135 : vector<8x128xf32>
    %137 = vector.extract_strided_slice %136 {offsets = [0, 0], sizes = [8, 96], strides = [1, 1]} : vector<8x128xf32> to vector<8x96xf32>
    %138 = arith.negf %137 : vector<8x96xf32>
    %139 = math.exp %138 : vector<8x96xf32>
    %cst_33 = arith.constant 1.000000e+00 : f32
    %140 = vector.broadcast %cst_33 : f32 to vector<8x96xf32>
    %141 = arith.addf %140, %139 : vector<8x96xf32>
    %142 = arith.divf %140, %141 : vector<8x96xf32>
    %143 = vector.extract_strided_slice %136 {offsets = [0, 96], sizes = [8, 32], strides = [1, 1]} : vector<8x128xf32> to vector<8x32xf32>
    %144 = math.tanh %143 : vector<8x32xf32>
    %145 = vector.extract_strided_slice %142 {offsets = [0, 0], sizes = [8, 32], strides = [1, 1]} : vector<8x96xf32> to vector<8x32xf32>
    %146 = vector.extract_strided_slice %142 {offsets = [0, 32], sizes = [8, 32], strides = [1, 1]} : vector<8x96xf32> to vector<8x32xf32>
    %147 = vector.extract_strided_slice %142 {offsets = [0, 64], sizes = [8, 32], strides = [1, 1]} : vector<8x96xf32> to vector<8x32xf32>
    %148 = arith.mulf %146, %111 : vector<8x32xf32>
    %149 = arith.mulf %145, %144 : vector<8x32xf32>
    %150 = arith.addf %148, %149 : vector<8x32xf32>
    %151 = math.tanh %150 : vector<8x32xf32>
    %152 = arith.mulf %147, %151 : vector<8x32xf32>
    %cst_34 = arith.constant dense<0.000000e+00> : vector<8x64xf32>
    %153 = tpu.matmul %152, %8, %cst_34 {dimension_numbers = #tpu.dot_dimension_numbers<[1], [0], [0], [1], [0, 0, 1, 1], [], []>} : vector<8x32xf32>, vector<32x64xf32>, vector<8x64xf32> -> vector<8x64xf32>
    %cst_35 = arith.constant dense<0.000000e+00> : vector<8x64xf32>
    %154 = tpu.matmul %133, %9, %cst_35 {dimension_numbers = #tpu.dot_dimension_numbers<[1], [0], [0], [1], [0, 0, 1, 1], [], []>} : vector<8x16xf32>, vector<16x64xf32>, vector<8x64xf32> -> vector<8x64xf32>
    %155 = arith.addf %153, %154 : vector<8x64xf32>
    %156 = arith.addf %155, %12 : vector<8x64xf32>
    %157 = vector.extract_strided_slice %156 {offsets = [0, 0], sizes = [8, 48], strides = [1, 1]} : vector<8x64xf32> to vector<8x48xf32>
    %158 = arith.negf %157 : vector<8x48xf32>
    %159 = math.exp %158 : vector<8x48xf32>
    %cst_36 = arith.constant 1.000000e+00 : f32
    %160 = vector.broadcast %cst_36 : f32 to vector<8x48xf32>
    %161 = arith.addf %160, %159 : vector<8x48xf32>
    %162 = arith.divf %160, %161 : vector<8x48xf32>
    %163 = vector.extract_strided_slice %156 {offsets = [0, 48], sizes = [8, 16], strides = [1, 1]} : vector<8x64xf32> to vector<8x16xf32>
    %164 = math.tanh %163 : vector<8x16xf32>
    %165 = vector.extract_strided_slice %162 {offsets = [0, 0], sizes = [8, 16], strides = [1, 1]} : vector<8x48xf32> to vector<8x16xf32>
    %166 = vector.extract_strided_slice %162 {offsets = [0, 16], sizes = [8, 16], strides = [1, 1]} : vector<8x48xf32> to vector<8x16xf32>
    %167 = vector.extract_strided_slice %162 {offsets = [0, 32], sizes = [8, 16], strides = [1, 1]} : vector<8x48xf32> to vector<8x16xf32>
    %168 = arith.mulf %166, %131 : vector<8x16xf32>
    %169 = arith.mulf %165, %164 : vector<8x16xf32>
    %170 = arith.addf %168, %169 : vector<8x16xf32>
    %171 = math.tanh %170 : vector<8x16xf32>
    %172 = arith.mulf %167, %171 : vector<8x16xf32>
    %173 = vector.extract_strided_slice %6 {offsets = [32, 0], sizes = [8, 128], strides = [1, 1]} : vector<64x128xf32> to vector<8x128xf32>
    %cst_37 = arith.constant dense<0.000000e+00> : vector<8x128xf32>
    %174 = tpu.matmul %152, %7, %cst_37 {dimension_numbers = #tpu.dot_dimension_numbers<[1], [0], [0], [1], [0, 0, 1, 1], [], []>} : vector<8x32xf32>, vector<32x128xf32>, vector<8x128xf32> -> vector<8x128xf32>
    %175 = arith.addf %173, %174 : vector<8x128xf32>
    %176 = vector.extract_strided_slice %175 {offsets = [0, 0], sizes = [8, 96], strides = [1, 1]} : vector<8x128xf32> to vector<8x96xf32>
    %177 = arith.negf %176 : vector<8x96xf32>
    %178 = math.exp %177 : vector<8x96xf32>
    %cst_38 = arith.constant 1.000000e+00 : f32
    %179 = vector.broadcast %cst_38 : f32 to vector<8x96xf32>
    %180 = arith.addf %179, %178 : vector<8x96xf32>
    %181 = arith.divf %179, %180 : vector<8x96xf32>
    %182 = vector.extract_strided_slice %175 {offsets = [0, 96], sizes = [8, 32], strides = [1, 1]} : vector<8x128xf32> to vector<8x32xf32>
    %183 = math.tanh %182 : vector<8x32xf32>
    %184 = vector.extract_strided_slice %181 {offsets = [0, 0], sizes = [8, 32], strides = [1, 1]} : vector<8x96xf32> to vector<8x32xf32>
    %185 = vector.extract_strided_slice %181 {offsets = [0, 32], sizes = [8, 32], strides = [1, 1]} : vector<8x96xf32> to vector<8x32xf32>
    %186 = vector.extract_strided_slice %181 {offsets = [0, 64], sizes = [8, 32], strides = [1, 1]} : vector<8x96xf32> to vector<8x32xf32>
    %187 = arith.mulf %185, %150 : vector<8x32xf32>
    %188 = arith.mulf %184, %183 : vector<8x32xf32>
    %189 = arith.addf %187, %188 : vector<8x32xf32>
    %190 = math.tanh %189 : vector<8x32xf32>
    %191 = arith.mulf %186, %190 : vector<8x32xf32>
    %cst_39 = arith.constant dense<0.000000e+00> : vector<8x64xf32>
    %192 = tpu.matmul %191, %8, %cst_39 {dimension_numbers = #tpu.dot_dimension_numbers<[1], [0], [0], [1], [0, 0, 1, 1], [], []>} : vector<8x32xf32>, vector<32x64xf32>, vector<8x64xf32> -> vector<8x64xf32>
    %cst_40 = arith.constant dense<0.000000e+00> : vector<8x64xf32>
    %193 = tpu.matmul %172, %9, %cst_40 {dimension_numbers = #tpu.dot_dimension_numbers<[1], [0], [0], [1], [0, 0, 1, 1], [], []>} : vector<8x16xf32>, vector<16x64xf32>, vector<8x64xf32> -> vector<8x64xf32>
    %194 = arith.addf %192, %193 : vector<8x64xf32>
    %195 = arith.addf %194, %12 : vector<8x64xf32>
    %196 = vector.extract_strided_slice %195 {offsets = [0, 0], sizes = [8, 48], strides = [1, 1]} : vector<8x64xf32> to vector<8x48xf32>
    %197 = arith.negf %196 : vector<8x48xf32>
    %198 = math.exp %197 : vector<8x48xf32>
    %cst_41 = arith.constant 1.000000e+00 : f32
    %199 = vector.broadcast %cst_41 : f32 to vector<8x48xf32>
    %200 = arith.addf %199, %198 : vector<8x48xf32>
    %201 = arith.divf %199, %200 : vector<8x48xf32>
    %202 = vector.extract_strided_slice %195 {offsets = [0, 48], sizes = [8, 16], strides = [1, 1]} : vector<8x64xf32> to vector<8x16xf32>
    %203 = math.tanh %202 : vector<8x16xf32>
    %204 = vector.extract_strided_slice %201 {offsets = [0, 0], sizes = [8, 16], strides = [1, 1]} : vector<8x48xf32> to vector<8x16xf32>
    %205 = vector.extract_strided_slice %201 {offsets = [0, 16], sizes = [8, 16], strides = [1, 1]} : vector<8x48xf32> to vector<8x16xf32>
    %206 = vector.extract_strided_slice %201 {offsets = [0, 32], sizes = [8, 16], strides = [1, 1]} : vector<8x48xf32> to vector<8x16xf32>
    %207 = arith.mulf %205, %170 : vector<8x16xf32>
    %208 = arith.mulf %204, %203 : vector<8x16xf32>
    %209 = arith.addf %207, %208 : vector<8x16xf32>
    %210 = math.tanh %209 : vector<8x16xf32>
    %211 = arith.mulf %206, %210 : vector<8x16xf32>
    %212 = vector.extract_strided_slice %6 {offsets = [40, 0], sizes = [8, 128], strides = [1, 1]} : vector<64x128xf32> to vector<8x128xf32>
    %cst_42 = arith.constant dense<0.000000e+00> : vector<8x128xf32>
    %213 = tpu.matmul %191, %7, %cst_42 {dimension_numbers = #tpu.dot_dimension_numbers<[1], [0], [0], [1], [0, 0, 1, 1], [], []>} : vector<8x32xf32>, vector<32x128xf32>, vector<8x128xf32> -> vector<8x128xf32>
    %214 = arith.addf %212, %213 : vector<8x128xf32>
    %215 = vector.extract_strided_slice %214 {offsets = [0, 0], sizes = [8, 96], strides = [1, 1]} : vector<8x128xf32> to vector<8x96xf32>
    %216 = arith.negf %215 : vector<8x96xf32>
    %217 = math.exp %216 : vector<8x96xf32>
    %cst_43 = arith.constant 1.000000e+00 : f32
    %218 = vector.broadcast %cst_43 : f32 to vector<8x96xf32>
    %219 = arith.addf %218, %217 : vector<8x96xf32>
    %220 = arith.divf %218, %219 : vector<8x96xf32>
    %221 = vector.extract_strided_slice %214 {offsets = [0, 96], sizes = [8, 32], strides = [1, 1]} : vector<8x128xf32> to vector<8x32xf32>
    %222 = math.tanh %221 : vector<8x32xf32>
    %223 = vector.extract_strided_slice %220 {offsets = [0, 0], sizes = [8, 32], strides = [1, 1]} : vector<8x96xf32> to vector<8x32xf32>
    %224 = vector.extract_strided_slice %220 {offsets = [0, 32], sizes = [8, 32], strides = [1, 1]} : vector<8x96xf32> to vector<8x32xf32>
    %225 = vector.extract_strided_slice %220 {offsets = [0, 64], sizes = [8, 32], strides = [1, 1]} : vector<8x96xf32> to vector<8x32xf32>
    %226 = arith.mulf %224, %189 : vector<8x32xf32>
    %227 = arith.mulf %223, %222 : vector<8x32xf32>
    %228 = arith.addf %226, %227 : vector<8x32xf32>
    %229 = math.tanh %228 : vector<8x32xf32>
    %230 = arith.mulf %225, %229 : vector<8x32xf32>
    %cst_44 = arith.constant dense<0.000000e+00> : vector<8x64xf32>
    %231 = tpu.matmul %230, %8, %cst_44 {dimension_numbers = #tpu.dot_dimension_numbers<[1], [0], [0], [1], [0, 0, 1, 1], [], []>} : vector<8x32xf32>, vector<32x64xf32>, vector<8x64xf32> -> vector<8x64xf32>
    %cst_45 = arith.constant dense<0.000000e+00> : vector<8x64xf32>
    %232 = tpu.matmul %211, %9, %cst_45 {dimension_numbers = #tpu.dot_dimension_numbers<[1], [0], [0], [1], [0, 0, 1, 1], [], []>} : vector<8x16xf32>, vector<16x64xf32>, vector<8x64xf32> -> vector<8x64xf32>
    %233 = arith.addf %231, %232 : vector<8x64xf32>
    %234 = arith.addf %233, %12 : vector<8x64xf32>
    %235 = vector.extract_strided_slice %234 {offsets = [0, 0], sizes = [8, 48], strides = [1, 1]} : vector<8x64xf32> to vector<8x48xf32>
    %236 = arith.negf %235 : vector<8x48xf32>
    %237 = math.exp %236 : vector<8x48xf32>
    %cst_46 = arith.constant 1.000000e+00 : f32
    %238 = vector.broadcast %cst_46 : f32 to vector<8x48xf32>
    %239 = arith.addf %238, %237 : vector<8x48xf32>
    %240 = arith.divf %238, %239 : vector<8x48xf32>
    %241 = vector.extract_strided_slice %234 {offsets = [0, 48], sizes = [8, 16], strides = [1, 1]} : vector<8x64xf32> to vector<8x16xf32>
    %242 = math.tanh %241 : vector<8x16xf32>
    %243 = vector.extract_strided_slice %240 {offsets = [0, 0], sizes = [8, 16], strides = [1, 1]} : vector<8x48xf32> to vector<8x16xf32>
    %244 = vector.extract_strided_slice %240 {offsets = [0, 16], sizes = [8, 16], strides = [1, 1]} : vector<8x48xf32> to vector<8x16xf32>
    %245 = vector.extract_strided_slice %240 {offsets = [0, 32], sizes = [8, 16], strides = [1, 1]} : vector<8x48xf32> to vector<8x16xf32>
    %246 = arith.mulf %244, %209 : vector<8x16xf32>
    %247 = arith.mulf %243, %242 : vector<8x16xf32>
    %248 = arith.addf %246, %247 : vector<8x16xf32>
    %249 = math.tanh %248 : vector<8x16xf32>
    %250 = arith.mulf %245, %249 : vector<8x16xf32>
    %251 = vector.extract_strided_slice %6 {offsets = [48, 0], sizes = [8, 128], strides = [1, 1]} : vector<64x128xf32> to vector<8x128xf32>
    %cst_47 = arith.constant dense<0.000000e+00> : vector<8x128xf32>
    %252 = tpu.matmul %230, %7, %cst_47 {dimension_numbers = #tpu.dot_dimension_numbers<[1], [0], [0], [1], [0, 0, 1, 1], [], []>} : vector<8x32xf32>, vector<32x128xf32>, vector<8x128xf32> -> vector<8x128xf32>
    %253 = arith.addf %251, %252 : vector<8x128xf32>
    %254 = vector.extract_strided_slice %253 {offsets = [0, 0], sizes = [8, 96], strides = [1, 1]} : vector<8x128xf32> to vector<8x96xf32>
    %255 = arith.negf %254 : vector<8x96xf32>
    %256 = math.exp %255 : vector<8x96xf32>
    %cst_48 = arith.constant 1.000000e+00 : f32
    %257 = vector.broadcast %cst_48 : f32 to vector<8x96xf32>
    %258 = arith.addf %257, %256 : vector<8x96xf32>
    %259 = arith.divf %257, %258 : vector<8x96xf32>
    %260 = vector.extract_strided_slice %253 {offsets = [0, 96], sizes = [8, 32], strides = [1, 1]} : vector<8x128xf32> to vector<8x32xf32>
    %261 = math.tanh %260 : vector<8x32xf32>
    %262 = vector.extract_strided_slice %259 {offsets = [0, 0], sizes = [8, 32], strides = [1, 1]} : vector<8x96xf32> to vector<8x32xf32>
    %263 = vector.extract_strided_slice %259 {offsets = [0, 32], sizes = [8, 32], strides = [1, 1]} : vector<8x96xf32> to vector<8x32xf32>
    %264 = vector.extract_strided_slice %259 {offsets = [0, 64], sizes = [8, 32], strides = [1, 1]} : vector<8x96xf32> to vector<8x32xf32>
    %265 = arith.mulf %263, %228 : vector<8x32xf32>
    %266 = arith.mulf %262, %261 : vector<8x32xf32>
    %267 = arith.addf %265, %266 : vector<8x32xf32>
    %268 = math.tanh %267 : vector<8x32xf32>
    %269 = arith.mulf %264, %268 : vector<8x32xf32>
    %cst_49 = arith.constant dense<0.000000e+00> : vector<8x64xf32>
    %270 = tpu.matmul %269, %8, %cst_49 {dimension_numbers = #tpu.dot_dimension_numbers<[1], [0], [0], [1], [0, 0, 1, 1], [], []>} : vector<8x32xf32>, vector<32x64xf32>, vector<8x64xf32> -> vector<8x64xf32>
    %cst_50 = arith.constant dense<0.000000e+00> : vector<8x64xf32>
    %271 = tpu.matmul %250, %9, %cst_50 {dimension_numbers = #tpu.dot_dimension_numbers<[1], [0], [0], [1], [0, 0, 1, 1], [], []>} : vector<8x16xf32>, vector<16x64xf32>, vector<8x64xf32> -> vector<8x64xf32>
    %272 = arith.addf %270, %271 : vector<8x64xf32>
    %273 = arith.addf %272, %12 : vector<8x64xf32>
    %274 = vector.extract_strided_slice %273 {offsets = [0, 0], sizes = [8, 48], strides = [1, 1]} : vector<8x64xf32> to vector<8x48xf32>
    %275 = arith.negf %274 : vector<8x48xf32>
    %276 = math.exp %275 : vector<8x48xf32>
    %cst_51 = arith.constant 1.000000e+00 : f32
    %277 = vector.broadcast %cst_51 : f32 to vector<8x48xf32>
    %278 = arith.addf %277, %276 : vector<8x48xf32>
    %279 = arith.divf %277, %278 : vector<8x48xf32>
    %280 = vector.extract_strided_slice %273 {offsets = [0, 48], sizes = [8, 16], strides = [1, 1]} : vector<8x64xf32> to vector<8x16xf32>
    %281 = math.tanh %280 : vector<8x16xf32>
    %282 = vector.extract_strided_slice %279 {offsets = [0, 0], sizes = [8, 16], strides = [1, 1]} : vector<8x48xf32> to vector<8x16xf32>
    %283 = vector.extract_strided_slice %279 {offsets = [0, 16], sizes = [8, 16], strides = [1, 1]} : vector<8x48xf32> to vector<8x16xf32>
    %284 = vector.extract_strided_slice %279 {offsets = [0, 32], sizes = [8, 16], strides = [1, 1]} : vector<8x48xf32> to vector<8x16xf32>
    %285 = arith.mulf %283, %248 : vector<8x16xf32>
    %286 = arith.mulf %282, %281 : vector<8x16xf32>
    %287 = arith.addf %285, %286 : vector<8x16xf32>
    %288 = math.tanh %287 : vector<8x16xf32>
    %289 = arith.mulf %284, %288 : vector<8x16xf32>
    %290 = vector.extract_strided_slice %6 {offsets = [56, 0], sizes = [8, 128], strides = [1, 1]} : vector<64x128xf32> to vector<8x128xf32>
    %cst_52 = arith.constant dense<0.000000e+00> : vector<8x128xf32>
    %291 = tpu.matmul %269, %7, %cst_52 {dimension_numbers = #tpu.dot_dimension_numbers<[1], [0], [0], [1], [0, 0, 1, 1], [], []>} : vector<8x32xf32>, vector<32x128xf32>, vector<8x128xf32> -> vector<8x128xf32>
    %292 = arith.addf %290, %291 : vector<8x128xf32>
    %293 = vector.extract_strided_slice %292 {offsets = [0, 0], sizes = [8, 96], strides = [1, 1]} : vector<8x128xf32> to vector<8x96xf32>
    %294 = arith.negf %293 : vector<8x96xf32>
    %295 = math.exp %294 : vector<8x96xf32>
    %cst_53 = arith.constant 1.000000e+00 : f32
    %296 = vector.broadcast %cst_53 : f32 to vector<8x96xf32>
    %297 = arith.addf %296, %295 : vector<8x96xf32>
    %298 = arith.divf %296, %297 : vector<8x96xf32>
    %299 = vector.extract_strided_slice %292 {offsets = [0, 96], sizes = [8, 32], strides = [1, 1]} : vector<8x128xf32> to vector<8x32xf32>
    %300 = math.tanh %299 : vector<8x32xf32>
    %301 = vector.extract_strided_slice %298 {offsets = [0, 0], sizes = [8, 32], strides = [1, 1]} : vector<8x96xf32> to vector<8x32xf32>
    %302 = vector.extract_strided_slice %298 {offsets = [0, 32], sizes = [8, 32], strides = [1, 1]} : vector<8x96xf32> to vector<8x32xf32>
    %303 = vector.extract_strided_slice %298 {offsets = [0, 64], sizes = [8, 32], strides = [1, 1]} : vector<8x96xf32> to vector<8x32xf32>
    %304 = arith.mulf %302, %267 : vector<8x32xf32>
    %305 = arith.mulf %301, %300 : vector<8x32xf32>
    %306 = arith.addf %304, %305 : vector<8x32xf32>
    %307 = math.tanh %306 : vector<8x32xf32>
    %308 = arith.mulf %303, %307 : vector<8x32xf32>
    %cst_54 = arith.constant dense<0.000000e+00> : vector<8x64xf32>
    %309 = tpu.matmul %308, %8, %cst_54 {dimension_numbers = #tpu.dot_dimension_numbers<[1], [0], [0], [1], [0, 0, 1, 1], [], []>} : vector<8x32xf32>, vector<32x64xf32>, vector<8x64xf32> -> vector<8x64xf32>
    %cst_55 = arith.constant dense<0.000000e+00> : vector<8x64xf32>
    %310 = tpu.matmul %289, %9, %cst_55 {dimension_numbers = #tpu.dot_dimension_numbers<[1], [0], [0], [1], [0, 0, 1, 1], [], []>} : vector<8x16xf32>, vector<16x64xf32>, vector<8x64xf32> -> vector<8x64xf32>
    %311 = arith.addf %309, %310 : vector<8x64xf32>
    %312 = arith.addf %311, %12 : vector<8x64xf32>
    %313 = vector.extract_strided_slice %312 {offsets = [0, 0], sizes = [8, 48], strides = [1, 1]} : vector<8x64xf32> to vector<8x48xf32>
    %314 = arith.negf %313 : vector<8x48xf32>
    %315 = math.exp %314 : vector<8x48xf32>
    %cst_56 = arith.constant 1.000000e+00 : f32
    %316 = vector.broadcast %cst_56 : f32 to vector<8x48xf32>
    %317 = arith.addf %316, %315 : vector<8x48xf32>
    %318 = arith.divf %316, %317 : vector<8x48xf32>
    %319 = vector.extract_strided_slice %312 {offsets = [0, 48], sizes = [8, 16], strides = [1, 1]} : vector<8x64xf32> to vector<8x16xf32>
    %320 = math.tanh %319 : vector<8x16xf32>
    %321 = vector.extract_strided_slice %318 {offsets = [0, 0], sizes = [8, 16], strides = [1, 1]} : vector<8x48xf32> to vector<8x16xf32>
    %322 = vector.extract_strided_slice %318 {offsets = [0, 16], sizes = [8, 16], strides = [1, 1]} : vector<8x48xf32> to vector<8x16xf32>
    %323 = vector.extract_strided_slice %318 {offsets = [0, 32], sizes = [8, 16], strides = [1, 1]} : vector<8x48xf32> to vector<8x16xf32>
    %324 = arith.mulf %322, %287 : vector<8x16xf32>
    %325 = arith.mulf %321, %320 : vector<8x16xf32>
    %326 = arith.addf %324, %325 : vector<8x16xf32>
    %327 = math.tanh %326 : vector<8x16xf32>
    %328 = arith.mulf %323, %327 : vector<8x16xf32>
    %329 = tpu.concatenate %55, %94, %133, %172, %211, %250, %289, %328 in 1 : vector<8x16xf32>, vector<8x16xf32>, vector<8x16xf32>, vector<8x16xf32>, vector<8x16xf32>, vector<8x16xf32>, vector<8x16xf32>, vector<8x16xf32> -> vector<8x128xf32>
    %c0_57 = arith.constant 0 : index
    %c0_58 = arith.constant 0 : index
    %330 = vector.load %arg8[%c0_57, %c0_58] : memref<128x128xf32, #tpu.memory_space<vmem>>, vector<128x128xf32>
    %cst_59 = arith.constant dense<0.000000e+00> : vector<8x128xf32>
    %331 = tpu.matmul %329, %330, %cst_59 {dimension_numbers = #tpu.dot_dimension_numbers<[1], [0], [0], [1], [0, 0, 1, 1], [], []>} : vector<8x128xf32>, vector<128x128xf32>, vector<8x128xf32> -> vector<8x128xf32>
    %c0_60 = arith.constant 0 : index
    %c0_61 = arith.constant 0 : index
    %332 = vector.load %arg9[%c0_60, %c0_61] : memref<1x128xf32, #tpu.memory_space<vmem>>, vector<1x128xf32>
    %333 = vector.shape_cast %332 : vector<1x128xf32> to vector<1x128xf32>
    %334 = vector.broadcast %333 : vector<1x128xf32> to vector<8x128xf32>
    %335 = arith.addf %331, %334 : vector<8x128xf32>
    %c0_62 = arith.constant 0 : index
    %c0_63 = arith.constant 0 : index
    %336 = vector.load %arg10[%c0_62, %c0_63] : memref<8x128xf32, #tpu.memory_space<vmem>>, vector<8x128xf32>
    tpu.vector_store %arg10[%c0_62, %c0_63], %335 {strides = array<i32>} : memref<8x128xf32, #tpu.memory_space<vmem>>, vector<8x128xf32>,
    return
  }
  func.func @transform_0(%arg0: i32) -> (i32, i32) {
    %c0_i32 = arith.constant 0 : i32
    %c0_i32_0 = arith.constant 0 : i32
    %c0_i32_1 = arith.constant 0 : i32
    return %c0_i32, %c0_i32_0 : i32, i32
  }
  func.func @transform_1(%arg0: i32) -> (i32, i32) {
    %c0_i32 = arith.constant 0 : i32
    %c0_i32_0 = arith.constant 0 : i32
    %c0_i32_1 = arith.constant 0 : i32
    return %c0_i32, %c0_i32_0 : i32, i32
  }
  func.func @transform_2(%arg0: i32) -> (i32, i32) {
    %c0_i32 = arith.constant 0 : i32
    %c0_i32_0 = arith.constant 0 : i32
    %c0_i32_1 = arith.constant 0 : i32
    return %c0_i32, %c0_i32_0 : i32, i32
  }
  func.func @transform_3(%arg0: i32) -> (i32, i32) {
    %c0_i32 = arith.constant 0 : i32
    %c0_i32_0 = arith.constant 0 : i32
    %c0_i32_1 = arith.constant 0 : i32
    return %c0_i32, %c0_i32_0 : i32, i32
  }
  func.func @transform_4(%arg0: i32) -> (i32, i32) {
    %c0_i32 = arith.constant 0 : i32
    %c0_i32_0 = arith.constant 0 : i32
    %c0_i32_1 = arith.constant 0 : i32
    return %c0_i32, %c0_i32_0 : i32, i32
  }
  func.func @transform_5(%arg0: i32) -> (i32, i32) {
    %c0_i32 = arith.constant 0 : i32
    %c0_i32_0 = arith.constant 0 : i32
    %c0_i32_1 = arith.constant 0 : i32
    return %c0_i32, %c0_i32_0 : i32, i32
  }
  func.func @transform_6(%arg0: i32) -> (i32, i32) {
    %c0_i32 = arith.constant 0 : i32
    %c0_i32_0 = arith.constant 0 : i32
    %c0_i32_1 = arith.constant 0 : i32
    return %c0_i32, %c0_i32_0 : i32, i32
  }
  func.func @transform_7(%arg0: i32) -> (i32, i32) {
    %c0_i32 = arith.constant 0 : i32
    %c0_i32_0 = arith.constant 0 : i32
    %c0_i32_1 = arith.constant 0 : i32
    return %c0_i32, %c0_i32_0 : i32, i32
  }
  func.func @transform_8(%arg0: i32) -> (i32, i32) {
    %c0_i32 = arith.constant 0 : i32
    %c0_i32_0 = arith.constant 0 : i32
    %c0_i32_1 = arith.constant 0 : i32
    return %c0_i32, %c0_i32_0 : i32, i32
  }
  func.func @transform_9(%arg0: i32) -> (i32, i32) {
    %c0_i32 = arith.constant 0 : i32
    %c0_i32_0 = arith.constant 0 : i32
    %c0_i32_1 = arith.constant 0 : i32
    return %c0_i32, %c0_i32_0 : i32, i32
  }
}

</mosaic_0001>

<bundles_post_ra>
// kernel: tpu_custom_call.1
= control target key start
LH: loop header
LB: loop body
LE: loop exit
PB: predicated region body
PF: predicated region fallthrough
CT: control target
= control target key end

     0   :  { %14 = vsyncpa [#allocation3], 0  ;;  %s3827_s0 = inlined_call_operand.vmem [shape: f32[64,16], index: 0, kind: input, shape index: {}]   ;;  %s3828_s1 = inlined_call_operand.vmem [shape: f32[16,128], index: 1, kind: input, shape index: {}]   ;;  %s3829_s2 = inlined_call_operand.vmem [shape: f32[32,128], index: 2, kind: input, shape index: {}]   ;;  %s3830_s3 = inlined_call_operand.vmem [shape: f32[1,128], index: 3, kind: input, shape index: {}]   ;;  %s3831_s4 = inlined_call_operand.vmem [shape: f32[32,64], index: 4, kind: input, shape index: {}]   ;;  %s3832_s5 = inlined_call_operand.vmem [shape: f32[16,64], index: 5, kind: input, shape index: {}]   ;;  %s3833_s6 = inlined_call_operand.vmem [shape: f32[1,64], index: 6, kind: input, shape index: {}]   ;;  %s3834_s7 = inlined_call_operand.hbm [shape: f32[128,128], index: 7, kind: input, shape index: {}]   ;;  %s3835_s8 = inlined_call_operand.vmem [shape: f32[1,128], index: 8, kind: input, shape index: {}]   ;;  %s3836_s9 = inlined_call_operand.hbm [shape: f32[8,128], index: 9, kind: output, shape index: {}]  }
   0x1   :  { %15 = vsyncpa [#allocation4], 0  ;;  %s3314_s30 = smov [#allocation2]   ;;  %s3266_s13 = scalar_lea.hbm %s3834_s7, 2048 }
   0x2   :  { %s35_s10 = sshll.u32 %s3314_s30, 4  ;;  %p3267_p0 = scmp.ne.s32.totalorder %s3834_s7, %s3266_s13  ;;  %s36_s10 = int_to_ptr.vmem [resolvable:$true] %s35_s10 }
   0x3   :  { %p3270_p1 = scmp.lt.u32.totalorder %s3266_s13, %s3834_s7 }
   0x5   :  { %p3272_p2 = pnand %p3270_p1, %p3267_p0 }
   0x7   :  { %3275 = shalt.err (!%p3272_p2)
}
   0x8   :  { %s3276_s18 = scalar_lea.vmem %s36_s10, 2048  ;;  %p3281_p4 = scmp.lt.s32.totalorder %s36_s10, %s36_s10 }
   0x9   :  { %p3277_p3 = scmp.ne.s32.totalorder %s36_s10, %s3276_s18  ;;  %p3282_p5 = scmp.lt.s32.totalorder %s3276_s18, %s3276_s18 }
   0xb   :  { %p3283_p6 = por %p3282_p5, %p3281_p4 }
   0xd   :  { %p3284_p7 = pnand %p3283_p6, %p3277_p3 }
   0xf   :  { %3287 = shalt.err (!%p3284_p7)
}
  0x10   :  { %s3315_s19 = smov 128   ;;  %s3316_s20 = smov 8  }
  0x11   :  { %41 = dma.hbm_to_vmem [thread:$0]  %s3834_s7, 2048, %s36_s10, [#allocation3], %s3315_s19, %s3315_s19, %s3316_s20  }
  0x12   :  { %3310 = dma.done.wait [#allocation3], 2048  }
  0x13   :  { %3311 = vsyncadd [#allocation3], 4294965248  ;;  %v3317_v0 = vmov 0.0|0.0   ;;  %vm3318_vm0 = vmmov 0   ;;  %v3319_v1 = vmov 0.0   ;;  %vm64_vm1 = vcmask 130048  }
  0x14   :  { %2989 = vmatprep.subr.bf16.mxu0 %v3317_v0  ;;  %2735 = vmatprep.mubr.msk.f32.mxu0 %vm3318_vm0, %v3319_v1  ;;  %v55_v2 = vld [vmem:[%s3828_s1] sm:$0xff]  ;;  %v56_v3 = vld [vmem:[%s3828_s1 + $0x8] sm:$0xff]  ;;  %v49_v10 = vld [vmem:[%s3827_s0 + $0x10] sm:$0xff]  ;;  %vm211_vm2 = vcmask 261120   ;;  %s3322_s18 = smov 80   ;;  %s3324_s19 = smov 96  }
  0x15   :  { %v47_v4 = vld [vmem:[%s3827_s0] sm:$0xff]  ;;  %v2976_v5 = vpack.c.bf16 %v56_v3, %v55_v2  ;;  %v195_v7 = vld [vmem:[%s3829_s2 + $0x8] sm:$0xff]  ;;  %v196_v11 = vld [vmem:[%s3829_s2 + $0x10] sm:$0xff]  ;;  %s3325_s20 = smov 112   ;;  %s3326_s21 = smov 48   ;;  %vm2394_vm3 = vcmask 392192  }
  0x16   :  { %2697 = vmatprep.mubr.msk.f32.mxu1 %vm64_vm1, %v47_v4  ;;  %v194_v6 = vld [vmem:[%s3829_s2] sm:$0xff]  ;;  %v48_v8 = vld [vmem:[%s3827_s0 + $0x8] sm:$0xff]  ;;  %v197_v12 = vld [vmem:[%s3829_s2 + $0x18] sm:$0xff]  ;;  %vm2396_vm4 = vcmask 523264   ;;  %vm2398_vm5 = vcmask 654336   ;;  %vm2400_vm6 = vcmask 785408  }
  0x17   :  { %2977 = vmatprep.subr.bf16.mxu1 %v2976_v5  ;;  %v3412_v9 = vpack.c.bf16 %v195_v7, %v194_v6  ;;  %v50_v13 = vld [vmem:[%s3827_s0 + $0x18] sm:$0xff]  ;;  %v3430_v14 = vpack.c.bf16 %v197_v12, %v196_v11  ;;  %v51_v15 = vld [vmem:[%s3827_s0 + $0x20] sm:$0xff]  ;;  %v52_v16 = vld [vmem:[%s3827_s0 + $0x28] sm:$0xff]  ;;  %vm2402_vm7 = vcmask 916480   ;;  %s3327_s23 = smov [#allocation5]  }
  0x18   :  { %2979 = vmatpush3.bf16.msra.mxu1 %v2976_v5  ;;  %v53_v17 = vld [vmem:[%s3827_s0 + $0x30] sm:$0xff]  ;;  %v54_v18 = vld [vmem:[%s3827_s0 + $0x38] sm:$0xff]  ;;  %v2513_v19 = vld [vmem:[%s3830_s3] ss:$0 sm:$0xff]  ;;  %s3320_s0 = smov 32   ;;  %s2504_s24 = sshll.u32 %s3327_s23, 4  ;;  %s2505_s24 = int_to_ptr.vmem [resolvable:$true] %s2504_s24 }
  0x19   :  { %2980 = vmatprep.subr.bf16.mxu1 %v3317_v0  ;;  %v202_v49 = vld [vmem:[%s3832_s5] sm:$0xff]  ;;  %v203_v50 = vld [vmem:[%s3832_s5 + $0x8] sm:$0xff]  ;;  %v200_v54 = vld [vmem:[%s3831_s4 + $0x10] sm:$0xff]  ;;  %s3288_s25 = scalar_lea.vmem %s2505_s24, 128  ;;  %p3293_p9 = scmp.lt.s32.totalorder %s2505_s24, %s2505_s24 }
  0x1a   :  { %v198_v51 = vld [vmem:[%s3831_s4] sm:$0xff]  ;;  %v3488_v52 = vpack.c.bf16 %v203_v50, %v202_v49  ;;  %v199_v53 = vld [vmem:[%s3831_s4 + $0x8] sm:$0xff]  ;;  %v201_v55 = vld [vmem:[%s3831_s4 + $0x18] sm:$0xff]  ;;  %s3321_s4 = smov 64   ;;  %p3289_p8 = scmp.ne.s32.totalorder %s2505_s24, %s3288_s25 }
  0x1b   :  { %2698 = vmatmul.mubr.msk.f32.vlgmr.msra.gmra.mrb[0].mxu1 %vm64_vm1, %v48_v8  ;;  %v3499_v56 = vpack.c.bf16 %v199_v53, %v198_v51  ;;  %v3504_v57 = vpack.c.bf16 %v201_v55, %v200_v54  ;;  %v3533_v2 = vld [vmem:[%s3833_s6] ss:$0 sm:$0xff]  ;;  %s3323_s6 = smov 16   ;;  %p3294_p10 = scmp.lt.s32.totalorder %s3288_s25, %s3288_s25 }
  0x1c   :  { %2982 = vmatpush3.bf16.msra.mxu1 %v3412_v9  ;;  %2700 = vmatprep.mubr.msk.f32.mxu1 %vm64_vm1, %v49_v10 }
  0x1d   :  { %2983 = vmatprep.subr.bf16.mxu1 %v3317_v0  ;;  %2991 = vmatpush3.bf16.msra.mxu0 %v3499_v56  ;;  %p3295_p11 = por %p3294_p10, %p3293_p9 }
  0x1e   :  { %2992 = vmatprep.subr.bf16.mxu0 %v3317_v0 }
  0x1f   :  { %2701 = vmatmul.mubr.msk.f32.gmra.mrb[2].mxu1 %vm64_vm1, %v50_v13  ;;  %p3296_p12 = pnand %p3295_p11, %p3289_p8 }
  0x20   :  { %2703 = vmatprep.mubr.msk.f32.mxu1 %vm64_vm1, %v51_v15  ;;  %2985 = vmatpush3.bf16.msra.mxu1 %v3430_v14 }
  0x21   :  { %2986 = vmatprep.subr.bf16.mxu1 %v3317_v0  ;;  %2994 = vmatpush3.bf16.msra.mxu0 %v3504_v57 }
  0x22   :  { %3001 = vmatprep.subr.bf16.mxu0 %v3317_v0 }
  0x23   :  { %2704 = vmatmul.mubr.msk.f32.gmra.mrb[4].mxu1 %vm64_vm1, %v52_v16 }
  0x24   :  { %2706 = vmatprep.mubr.msk.f32.mxu1 %vm64_vm1, %v53_v17 }
  0x27   :  { %2707 = vmatmul.mubr.msk.f32.gmra.mrb[6].mxu1 %vm64_vm1, %v54_v18 }
  0x28   :  { %2717 = vmatprep.mubr.msk.f32.mxu1 %vm3318_vm0, %v3319_v1 }
  0x2b   :  { %2718 = vmatmul.mubr.f32.vlgmr.msra.gmra.mrb[8].mxu1 %v3319_v1 }
  0x2c   :  { %2724 = vmatprep.mubr.msk.f32.mxu1 %vm3318_vm0, %v3319_v1  ;;  %2988 = vmatpush3.bf16.msra.mxu1 %v3488_v52 }
  0x2d   :  { %2995 = vmatprep.subr.bf16.mxu1 %v3317_v0 }
  0x2f   :  { %2725 = vmatmul.mubr.f32.vlgmr.msra.gmra.mrb[10].mxu1 %v3319_v1 }
  0x30   :  { %2997 = vmatpush3.bf16.msra.mxu1 %v3412_v9  ;;  %2746 = vmatprep.mubr.msk.f32.mxu1 %vm3318_vm0, %v3319_v1 }
  0x31   :  { %2998 = vmatprep.subr.bf16.mxu1 %v3317_v0 }
  0x34   :  { %3000 = vmatpush3.bf16.msra.mxu1 %v3430_v14 }
  0x35   :  { %3004 = vmatprep.subr.bf16.mxu1 %v3317_v0 }
  0xee   :  { %v2699_v20 = vpop.f32.mrb[0].mxu1 }
  0xef   :  { %v3460_v21 = vadd.f32 %v2699_v20, %v2513_v19  ;;  %v155_v22 = vpop.f32.mrb[1].mxu1 }
  0xf0   :  { %v156_v35 = vadd.f32 %v2513_v19, %v155_v22 }
  0xf2   :  { %v2702_v23 = vpop.f32.mrb[2].mxu1 }
  0xf3   :  { %v3462_v24 = vadd.f32 %v2702_v23, %v2513_v19  ;;  %v165_v25 = vpop.f32.mrb[3].mxu1 }
  0xf4   :  { %v3464_v26 = vadd.f32 %v2513_v19, %v165_v25 }
  0xf6   :  { %v2705_v27 = vpop.f32.mrb[4].mxu1 }
  0xf7   :  { %v3466_v28 = vadd.f32 %v2705_v27, %v2513_v19  ;;  %v175_v29 = vpop.f32.mrb[5].mxu1 }
  0xf8   :  { %v3468_v30 = vadd.f32 %v2513_v19, %v175_v29 }
  0xfa   :  { %v2708_v31 = vpop.f32.mrb[6].mxu1 }
  0xfb   :  { %v3470_v32 = vadd.f32 %v2708_v31, %v2513_v19  ;;  %v185_v33 = vpop.f32.mrb[7].mxu1 }
  0xfc   :  { %v3472_v34 = vadd.f32 %v2513_v19, %v185_v33 }
  0xfe   :  { %v281_v36 = vpop.f32.mrb[8].mxu1 }
  0xff   :  { %v285_v37 = vadd.f32 %v281_v36, %v156_v35  ;;  %v2719_v38 = vpop.f32.mrb[9].mxu1 }
 0x101   :  { %3138 = vtanh.f32 %v285_v37  ;;  %v2523_v40 = vmul.f32 -1.442695, %v285_v37 }
 0x102   :  { %v378_v61 = vpop.f32.mrb[10].mxu1 }
 0x103   :  { %3140 = vpow2.f32 %v2523_v40  ;;  %v2726_v62 = vpop.f32.mrb[11].mxu1 }
 0x10b   :  { %v3139_v39 = vpop.eup %3138 }
 0x10c   :  { %295 = vrot.lane.b32.xlu0 %v3139_v39, %s3320_s0 }
 0x10d   :  { %v3141_v41 = vpop.eup %3140 }
 0x10e   :  { %v289_v42 = vadd.f32 1.0, %v3141_v41 }
 0x110   :  { %3142 = vrcp.f32 %v289_v42 }
 0x11a   :  { %v3143_v43 = vpop.eup %3142 }
 0x11b   :  { %v293_v46 = vmul.f32 0.0, %v3143_v43 }
 0x17e   :  { %v296_v44 = vpop.permute.xlu0 %295 }
 0x17f   :  { %v298_v45 = vmul.f32 %v3143_v43, %v296_v44 }
 0x181   :  { %300 = vrot.lane.b32.xlu0 %v298_v45, %s3320_s0 }
 0x1f3   :  { %v301_v47 = vpop.permute.xlu0 %300 }
 0x1f4   :  { %v3476_v48 = vadd.f32 %v301_v47, %v293_v46 }
 0x1f6   :  { %3144 = vtanh.f32 %v3476_v48 }
 0x200   :  { %v3145_v58 = vpop.eup %3144 }
 0x201   :  { %306 = vrot.lane.b32.xlu1 %v3145_v58, %s3320_s0 }
 0x273   :  { %v307_v59 = vpop.permute.xlu1 %306 }
 0x274   :  { %v309_v60 = vmul.f32 %v3143_v43, %v307_v59 }
 0x276   :  { %383 = vrot.lane.b32.xlu1 %v309_v60, %s3321_s4 }
 0x2e8   :  { %v384_v63 = vpop.permute.xlu1 %383 }
 0x2e9   :  { %2736 = vmatmul.mubr.msk.f32.vlgmr.msra.gmra.mrb[0].mxu0 %vm211_vm2, %v384_v63  ;;  %2747 = vmatmul.mubr.msk.f32.vlgmr.msra.gmra.mrb[12].mxu1 %vm211_vm2, %v384_v63 }
 0x2ea   :  { %3006 = vmatpush3.bf16.msra.mxu1 %v3499_v56  ;;  %3003 = vmatpush3.bf16.msra.mxu0 %v3488_v52 }
 0x2eb   :  { %3007 = vmatprep.subr.bf16.mxu1 %v3317_v0  ;;  %2764 = vmatprep.mubr.msk.f32.mxu1 %vm3318_vm0, %v3319_v1 }
 0x2ec   :  { %2753 = vmatprep.mubr.msk.f32.mxu0 %vm3318_vm0, %v3319_v1  ;;  %3010 = vmatprep.subr.bf16.mxu0 %v3317_v0 }
 0x2ee   :  { %3009 = vmatpush3.bf16.msra.mxu1 %v3504_v57 }
 0x2ef   :  { %3016 = vmatprep.subr.bf16.mxu1 %v3317_v0 }
 0x3bc   :  { %v453_v3 = vpop.f32.mrb[0].mxu0  ;;  %v548_v4 = vpop.f32.mrb[12].mxu1 }
 0x3bd   :  { %v454_v5 = vadd.f32 %v453_v3, %v378_v61  ;;  %v552_v6 = vadd.f32 %v548_v4, %v3460_v21  ;;  %v2737_v7 = vpop.f32.mrb[1].mxu0  ;;  %v2748_v8 = vpop.f32.mrb[13].mxu1 }
 0x3bf   :  { %v457_v10 = vadd.f32 %v3533_v2, %v454_v5  ;;  %3146 = vtanh.f32 %v552_v6  ;;  %v2527_v13 = vmul.f32 -1.442695, %v552_v6 }
 0x3c1   :  { %3148 = vtanh.f32 %v457_v10  ;;  %v2525_v15 = vmul.f32 -1.442695, %v457_v10 }
 0x3c2   :  { %3150 = vpow2.f32 %v2527_v13 }
 0x3c3   :  { %3152 = vpow2.f32 %v2525_v15 }
 0x3c9   :  { %v3147_v11 = vpop.eup %3146 }
 0x3ca   :  { %562 = vrot.lane.b32.xlu1 %v3147_v11, %s3320_s0 }
 0x3cb   :  { %v3149_v12 = vpop.eup %3148 }
 0x3cc   :  { %467 = vrot.lane.b32.xlu0 %v3149_v12, %s3322_s18  ;;  %v3151_v16 = vpop.eup %3150 }
 0x3cd   :  { %v3153_v17 = vpop.eup %3152  ;;  %v556_v18 = vadd.f32 1.0, %v3151_v16 }
 0x3ce   :  { %v461_v19 = vadd.f32 1.0, %v3153_v17 }
 0x3cf   :  { %3154 = vrcp.f32 %v556_v18 }
 0x3d0   :  { %3156 = vrcp.f32 %v461_v19 }
 0x3d9   :  { %v3155_v20 = vpop.eup %3154 }
 0x3da   :  { %v3157_v23 = vpop.eup %3156  ;;  %v560_v29 = vmul.f32 %v3155_v20, %v3476_v48 }
 0x3db   :  { %v465_v35 = vmul.f32 0.0, %v3157_v23 }
 0x43c   :  { %v563_v21 = vpop.permute.xlu1 %562 }
 0x43d   :  { %v565_v22 = vmul.f32 %v3155_v20, %v563_v21 }
 0x43e   :  { %v468_v25 = vpop.permute.xlu0 %467 }
 0x43f   :  { %v470_v27 = vmul.f32 %v3157_v23, %v468_v25  ;;  %567 = vrot.lane.b32.xlu1 %v565_v22, %s3320_s0 }
 0x441   :  { %472 = vrot.lane.b32.xlu0 %v470_v27, %s3323_s6 }
 0x4b1   :  { %v568_v31 = vpop.permute.xlu1 %567 }
 0x4b2   :  { %v3542_v33 = vadd.f32 %v568_v31, %v560_v29 }
 0x4b3   :  { %v473_v36 = vpop.permute.xlu0 %472 }
 0x4b4   :  { %3158 = vtanh.f32 %v3542_v33  ;;  %v3545_v37 = vadd.f32 %v473_v36, %v465_v35 }
 0x4b6   :  { %3160 = vtanh.f32 %v3545_v37 }
 0x4be   :  { %v3159_v38 = vpop.eup %3158 }
 0x4bf   :  { %573 = vrot.lane.b32.xlu1 %v3159_v38, %s3320_s0 }
 0x4c0   :  { %v3161_v39 = vpop.eup %3160 }
 0x4c1   :  { %478 = vrot.lane.b32.xlu0 %v3161_v39, %s3323_s6 }
 0x531   :  { %v574_v40 = vpop.permute.xlu1 %573 }
 0x532   :  { %v576_v41 = vmul.f32 %v3155_v20, %v574_v40 }
 0x533   :  { %v479_v42 = vpop.permute.xlu0 %478 }
 0x534   :  { %v481_v43 = vmul.f32 %v3157_v23, %v479_v42  ;;  %653 = vrot.lane.b32.xlu1 %v576_v41, %s3321_s4 }
 0x536   :  { %578 = vrot.lane.b32.xlu0 %v481_v43, %s3324_s19 }
 0x5a6   :  { %v654_v44 = vpop.permute.xlu1 %653 }
 0x5a7   :  { %2765 = vmatmul.mubr.msk.f32.vlgmr.msra.gmra.mrb[14].mxu1 %vm211_vm2, %v654_v44 }
 0x5a8   :  { %v3553_v45 = vpop.permute.xlu0 %578  ;;  %3018 = vmatpush3.bf16.msra.mxu1 %v3488_v52  ;;  %2782 = vmatprep.mubr.msk.f32.mxu1 %vm3318_vm0, %v3319_v1 }
 0x5a9   :  { %2754 = vmatmul.mubr.msk.f32.vlgmr.msra.gmra.mrb[2].mxu0 %vm64_vm1, %v3553_v45  ;;  %3025 = vmatprep.subr.bf16.mxu1 %v3317_v0 }
 0x5aa   :  { %3012 = vmatpush3.bf16.msra.mxu0 %v3412_v9  ;;  %2775 = vmatprep.mubr.msk.f32.mxu0 %vm3318_vm0, %v3319_v1 }
 0x5ab   :  { %3013 = vmatprep.subr.bf16.mxu0 %v3317_v0 }
 0x5ae   :  { %3015 = vmatpush3.bf16.msra.mxu0 %v3430_v14 }
 0x5af   :  { %3019 = vmatprep.subr.bf16.mxu0 %v3317_v0 }
 0x5b1   :  { %2776 = vmatmul.mubr.msk.f32.vlgmr.msra.gmra.mrb[4].mxu0 %vm211_vm2, %v654_v44 }
 0x5b2   :  { %3021 = vmatpush3.bf16.msra.mxu0 %v3499_v56  ;;  %2793 = vmatprep.mubr.msk.f32.mxu0 %vm3318_vm0, %v3319_v1 }
 0x5b3   :  { %3022 = vmatprep.subr.bf16.mxu0 %v3317_v0 }
 0x5b6   :  { %3024 = vmatpush3.bf16.msra.mxu0 %v3504_v57 }
 0x5b7   :  { %3031 = vmatprep.subr.bf16.mxu0 %v3317_v0 }
 0x67a   :  { %v723_v46 = vpop.f32.mrb[14].mxu1 }
 0x67b   :  { %v2766_v47 = vpop.f32.mrb[15].mxu1 }
 0x67c   :  { %v648_v48 = vpop.f32.mrb[2].mxu0 }
 0x67d   :  { %v724_v49 = vadd.f32 %v723_v46, %v648_v48  ;;  %v2755_v50 = vpop.f32.mrb[3].mxu0 }
 0x67f   :  { %v727_v51 = vadd.f32 %v3533_v2, %v724_v49 }
 0x681   :  { %3162 = vtanh.f32 %v727_v51  ;;  %v2530_v60 = vmul.f32 -1.442695, %v727_v51 }
 0x684   :  { %v818_v53 = vpop.f32.mrb[4].mxu0 }
 0x685   :  { %v822_v54 = vadd.f32 %v818_v53, %v3464_v26  ;;  %v2777_v55 = vpop.f32.mrb[5].mxu0 }
 0x687   :  { %3164 = vtanh.f32 %v822_v54  ;;  %v2532_v61 = vmul.f32 -1.442695, %v822_v54 }
 0x688   :  { %3166 = vpow2.f32 %v2530_v60 }
 0x689   :  { %3168 = vpow2.f32 %v2532_v61 }
 0x68b   :  { %v3163_v58 = vpop.eup %3162 }
 0x68c   :  { %737 = vrot.lane.b32.xlu0 %v3163_v58, %s3322_s18 }
 0x691   :  { %v3165_v59 = vpop.eup %3164 }
 0x692   :  { %832 = vrot.lane.b32.xlu1 %v3165_v59, %s3320_s0  ;;  %v3167_v62 = vpop.eup %3166 }
 0x693   :  { %v731_v63 = vadd.f32 1.0, %v3167_v62  ;;  %v3169_v3 = vpop.eup %3168 }
 0x694   :  { %v826_v4 = vadd.f32 1.0, %v3169_v3 }
 0x695   :  { %3170 = vrcp.f32 %v731_v63 }
 0x696   :  { %3172 = vrcp.f32 %v826_v4 }
 0x69f   :  { %v3171_v5 = vpop.eup %3170 }
 0x6a0   :  { %v3173_v7 = vpop.eup %3172  ;;  %v735_v11 = vmul.f32 %v3171_v5, %v3545_v37 }
 0x6a1   :  { %v830_v15 = vmul.f32 %v3173_v7, %v3542_v33 }
 0x6fe   :  { %v738_v26 = vpop.permute.xlu0 %737 }
 0x6ff   :  { %v740_v6 = vmul.f32 %v3171_v5, %v738_v26 }
 0x701   :  { %742 = vrot.lane.b32.xlu0 %v740_v6, %s3323_s6 }
 0x704   :  { %v833_v8 = vpop.permute.xlu1 %832 }
 0x705   :  { %v835_v10 = vmul.f32 %v3173_v7, %v833_v8 }
 0x707   :  { %837 = vrot.lane.b32.xlu1 %v835_v10, %s3320_s0 }
 0x773   :  { %v743_v12 = vpop.permute.xlu0 %742 }
 0x774   :  { %v3581_v13 = vadd.f32 %v743_v12, %v735_v11 }
 0x776   :  { %3174 = vtanh.f32 %v3581_v13 }
 0x779   :  { %v838_v16 = vpop.permute.xlu1 %837 }
 0x77a   :  { %v3585_v17 = vadd.f32 %v838_v16, %v830_v15 }
 0x77c   :  { %3176 = vtanh.f32 %v3585_v17 }
 0x780   :  { %v3175_v18 = vpop.eup %3174 }
 0x781   :  { %748 = vrot.lane.b32.xlu0 %v3175_v18, %s3323_s6 }
 0x786   :  { %v3177_v19 = vpop.eup %3176 }
 0x787   :  { %843 = vrot.lane.b32.xlu1 %v3177_v19, %s3320_s0 }
 0x7f3   :  { %v749_v20 = vpop.permute.xlu0 %748 }
 0x7f4   :  { %v3590_v21 = vmul.f32 %v3171_v5, %v749_v20 }
 0x7f6   :  { %848 = vrot.lane.b32.xlu0 %v3590_v21, %s3324_s19 }
 0x7f9   :  { %v844_v22 = vpop.permute.xlu1 %843 }
 0x7fa   :  { %v846_v23 = vmul.f32 %v3173_v7, %v844_v22 }
 0x7fc   :  { %923 = vrot.lane.b32.xlu1 %v846_v23, %s3321_s4 }
 0x868   :  { %v849_v25 = vpop.permute.xlu0 %848 }
 0x869   :  { %2783 = vmatmul.mubr.msk.f32.vlgmr.msra.gmra.mrb[16].mxu1 %vm64_vm1, %v849_v25 }
 0x86a   :  { %3027 = vmatpush3.bf16.msra.mxu1 %v3412_v9  ;;  %2804 = vmatprep.mubr.msk.f32.mxu1 %vm3318_vm0, %v3319_v1 }
 0x86b   :  { %3028 = vmatprep.subr.bf16.mxu1 %v3317_v0 }
 0x86e   :  { %3030 = vmatpush3.bf16.msra.mxu1 %v3430_v14  ;;  %v924_v27 = vpop.permute.xlu1 %923 }
 0x86f   :  { %2794 = vmatmul.mubr.msk.f32.vlgmr.msra.gmra.mrb[6].mxu0 %vm211_vm2, %v924_v27  ;;  %3034 = vmatprep.subr.bf16.mxu1 %v3317_v0 }
 0x870   :  { %3033 = vmatpush3.bf16.msra.mxu0 %v3488_v52  ;;  %2811 = vmatprep.mubr.msk.f32.mxu0 %vm3318_vm0, %v3319_v1 }
 0x871   :  { %2805 = vmatmul.mubr.msk.f32.vlgmr.msra.gmra.mrb[18].mxu1 %vm211_vm2, %v924_v27  ;;  %3040 = vmatprep.subr.bf16.mxu0 %v3317_v0 }
 0x872   :  { %3036 = vmatpush3.bf16.msra.mxu1 %v3499_v56  ;;  %2822 = vmatprep.mubr.msk.f32.mxu1 %vm3318_vm0, %v3319_v1 }
 0x873   :  { %3037 = vmatprep.subr.bf16.mxu1 %v3317_v0 }
 0x876   :  { %3039 = vmatpush3.bf16.msra.mxu1 %v3504_v57 }
 0x877   :  { %3046 = vmatprep.subr.bf16.mxu1 %v3317_v0 }
 0x93c   :  { %v918_v29 = vpop.f32.mrb[16].mxu1 }
 0x93d   :  { %v2784_v31 = vpop.f32.mrb[17].mxu1 }
 0x942   :  { %v993_v33 = vpop.f32.mrb[6].mxu0 }
 0x943   :  { %v994_v35 = vadd.f32 %v993_v33, %v918_v29  ;;  %v2795_v36 = vpop.f32.mrb[7].mxu0 }
 0x944   :  { %v1088_v37 = vpop.f32.mrb[18].mxu1 }
 0x945   :  { %v997_v38 = vadd.f32 %v3533_v2, %v994_v35  ;;  %v1092_v39 = vadd.f32 %v1088_v37, %v3462_v24  ;;  %v2806_v40 = vpop.f32.mrb[19].mxu1 }
 0x947   :  { %3178 = vtanh.f32 %v997_v38  ;;  %v2535_v43 = vmul.f32 -1.442695, %v997_v38  ;;  %v2537_v44 = vmul.f32 -1.442695, %v1092_v39 }
 0x948   :  { %3180 = vtanh.f32 %v1092_v39 }
 0x949   :  { %3182 = vpow2.f32 %v2535_v43 }
 0x94a   :  { %3184 = vpow2.f32 %v2537_v44 }
 0x951   :  { %v3179_v41 = vpop.eup %3178 }
 0x952   :  { %v3181_v42 = vpop.eup %3180  ;;  %1007 = vrot.lane.b32.xlu0 %v3179_v41, %s3322_s18 }
 0x953   :  { %1102 = vrot.lane.b32.xlu1 %v3181_v42, %s3320_s0  ;;  %v3183_v46 = vpop.eup %3182 }
 0x954   :  { %v3185_v47 = vpop.eup %3184  ;;  %v1001_v48 = vadd.f32 1.0, %v3183_v46 }
 0x955   :  { %v1096_v49 = vadd.f32 1.0, %v3185_v47 }
 0x956   :  { %3186 = vrcp.f32 %v1001_v48 }
 0x957   :  { %3188 = vrcp.f32 %v1096_v49 }
 0x960   :  { %v3187_v24 = vpop.eup %3186 }
 0x961   :  { %v3189_v51 = vpop.eup %3188  ;;  %v1005_v58 = vmul.f32 %v3187_v24, %v3581_v13 }
 0x962   :  { %v1100_v59 = vmul.f32 %v3189_v51, %v3585_v17 }
 0x9c4   :  { %v1008_v50 = vpop.permute.xlu0 %1007 }
 0x9c5   :  { %v1103_v53 = vpop.permute.xlu1 %1102  ;;  %v1010_v54 = vmul.f32 %v3187_v24, %v1008_v50 }
 0x9c6   :  { %v1105_v55 = vmul.f32 %v3189_v51, %v1103_v53 }
 0x9c7   :  { %1012 = vrot.lane.b32.xlu0 %v1010_v54, %s3323_s6 }
 0x9c8   :  { %1107 = vrot.lane.b32.xlu1 %v1105_v55, %s3320_s0 }
 0xa39   :  { %v1013_v60 = vpop.permute.xlu0 %1012 }
 0xa3a   :  { %v1108_v61 = vpop.permute.xlu1 %1107  ;;  %v3622_v62 = vadd.f32 %v1013_v60, %v1005_v58 }
 0xa3b   :  { %v3624_v63 = vadd.f32 %v1108_v61, %v1100_v59 }
 0xa3c   :  { %3190 = vtanh.f32 %v3622_v62 }
 0xa3d   :  { %3192 = vtanh.f32 %v3624_v63 }
 0xa46   :  { %v3191_v3 = vpop.eup %3190 }
 0xa47   :  { %v3193_v4 = vpop.eup %3192  ;;  %1018 = vrot.lane.b32.xlu0 %v3191_v3, %s3323_s6 }
 0xa48   :  { %1113 = vrot.lane.b32.xlu1 %v3193_v4, %s3320_s0 }
 0xab9   :  { %v1019_v5 = vpop.permute.xlu0 %1018 }
 0xaba   :  { %v1114_v26 = vpop.permute.xlu1 %1113  ;;  %v3630_v6 = vmul.f32 %v3187_v24, %v1019_v5 }
 0xabb   :  { %v1116_v7 = vmul.f32 %v3189_v51, %v1114_v26 }
 0xabc   :  { %1118 = vrot.lane.b32.xlu0 %v3630_v6, %s3324_s19 }
 0xabd   :  { %1193 = vrot.lane.b32.xlu1 %v1116_v7, %s3321_s4 }
 0xb2e   :  { %v1119_v8 = vpop.permute.xlu0 %1118 }
 0xb2f   :  { %v1194_v10 = vpop.permute.xlu1 %1193  ;;  %2812 = vmatmul.mubr.msk.f32.vlgmr.msra.gmra.mrb[8].mxu0 %vm64_vm1, %v1119_v8 }
 0xb30   :  { %2823 = vmatmul.mubr.msk.f32.vlgmr.msra.gmra.mrb[20].mxu1 %vm211_vm2, %v1194_v10  ;;  %3042 = vmatpush3.bf16.msra.mxu0 %v3412_v9 }
 0xb31   :  { %3043 = vmatprep.subr.bf16.mxu0 %v3317_v0  ;;  %2833 = vmatprep.mubr.msk.f32.mxu0 %vm3318_vm0, %v3319_v1 }
 0xb32   :  { %3048 = vmatpush3.bf16.msra.mxu1 %v3488_v52  ;;  %2840 = vmatprep.mubr.msk.f32.mxu1 %vm3318_vm0, %v3319_v1 }
 0xb33   :  { %3055 = vmatprep.subr.bf16.mxu1 %v3317_v0 }
 0xb34   :  { %3045 = vmatpush3.bf16.msra.mxu0 %v3430_v14 }
 0xb35   :  { %3049 = vmatprep.subr.bf16.mxu0 %v3317_v0 }
 0xb37   :  { %2834 = vmatmul.mubr.msk.f32.vlgmr.msra.gmra.mrb[10].mxu0 %vm211_vm2, %v1194_v10 }
 0xb38   :  { %3051 = vmatpush3.bf16.msra.mxu0 %v3499_v56  ;;  %2851 = vmatprep.mubr.msk.f32.mxu0 %vm3318_vm0, %v3319_v1 }
 0xb39   :  { %3052 = vmatprep.subr.bf16.mxu0 %v3317_v0 }
 0xb3c   :  { %3054 = vmatpush3.bf16.msra.mxu0 %v3504_v57 }
 0xb3d   :  { %3061 = vmatprep.subr.bf16.mxu0 %v3317_v0 }
 0xc02   :  { %v1188_v11 = vpop.f32.mrb[8].mxu0 }
 0xc03   :  { %v1263_v12 = vpop.f32.mrb[20].mxu1  ;;  %v2813_v13 = vpop.f32.mrb[9].mxu0 }
 0xc04   :  { %v1264_v15 = vadd.f32 %v1263_v12, %v1188_v11  ;;  %v2824_v16 = vpop.f32.mrb[21].mxu1 }
 0xc06   :  { %v1267_v17 = vadd.f32 %v3533_v2, %v1264_v15 }
 0xc08   :  { %3194 = vtanh.f32 %v1267_v17  ;;  %v2540_v25 = vmul.f32 -1.442695, %v1267_v17 }
 0xc0a   :  { %v1358_v18 = vpop.f32.mrb[10].mxu0 }
 0xc0b   :  { %v1362_v19 = vadd.f32 %v1358_v18, %v3468_v30  ;;  %v2835_v20 = vpop.f32.mrb[11].mxu0 }
 0xc0d   :  { %3196 = vtanh.f32 %v1362_v19  ;;  %v2542_v27 = vmul.f32 -1.442695, %v1362_v19 }
 0xc0e   :  { %3198 = vpow2.f32 %v2540_v25 }
 0xc0f   :  { %3200 = vpow2.f32 %v2542_v27 }
 0xc12   :  { %v3195_v22 = vpop.eup %3194 }
 0xc13   :  { %1277 = vrot.lane.b32.xlu0 %v3195_v22, %s3322_s18 }
 0xc17   :  { %v3197_v23 = vpop.eup %3196 }
 0xc18   :  { %1372 = vrot.lane.b32.xlu1 %v3197_v23, %s3320_s0  ;;  %v3199_v29 = vpop.eup %3198 }
 0xc19   :  { %v1271_v31 = vadd.f32 1.0, %v3199_v29  ;;  %v3201_v33 = vpop.eup %3200 }
 0xc1a   :  { %v1366_v35 = vadd.f32 1.0, %v3201_v33 }
 0xc1b   :  { %3202 = vrcp.f32 %v1271_v31 }
 0xc1c   :  { %3204 = vrcp.f32 %v1366_v35 }
 0xc25   :  { %v3203_v36 = vpop.eup %3202 }
 0xc26   :  { %v3205_v38 = vpop.eup %3204  ;;  %v1275_v41 = vmul.f32 %v3203_v36, %v3622_v62 }
 0xc27   :  { %v1370_v44 = vmul.f32 %v3205_v38, %v3624_v63 }
 0xc85   :  { %v1278_v30 = vpop.permute.xlu0 %1277 }
 0xc86   :  { %v1280_v37 = vmul.f32 %v3203_v36, %v1278_v30 }
 0xc88   :  { %1282 = vrot.lane.b32.xlu0 %v1280_v37, %s3323_s6 }
 0xc8a   :  { %v1373_v39 = vpop.permute.xlu1 %1372 }
 0xc8b   :  { %v1375_v40 = vmul.f32 %v3205_v38, %v1373_v39 }
 0xc8d   :  { %1377 = vrot.lane.b32.xlu1 %v1375_v40, %s3320_s0 }
 0xcfa   :  { %v1283_v42 = vpop.permute.xlu0 %1282 }
 0xcfb   :  { %v3661_v43 = vadd.f32 %v1283_v42, %v1275_v41 }
 0xcfd   :  { %3206 = vtanh.f32 %v3661_v43 }
 0xcff   :  { %v1378_v46 = vpop.permute.xlu1 %1377 }
 0xd00   :  { %v3665_v47 = vadd.f32 %v1378_v46, %v1370_v44 }
 0xd02   :  { %3208 = vtanh.f32 %v3665_v47 }
 0xd07   :  { %v3207_v48 = vpop.eup %3206 }
 0xd08   :  { %1288 = vrot.lane.b32.xlu0 %v3207_v48, %s3323_s6 }
 0xd0c   :  { %v3209_v49 = vpop.eup %3208 }
 0xd0d   :  { %1383 = vrot.lane.b32.xlu1 %v3209_v49, %s3320_s0 }
 0xd7a   :  { %v1289_v24 = vpop.permute.xlu0 %1288 }
 0xd7b   :  { %v3670_v50 = vmul.f32 %v3203_v36, %v1289_v24 }
 0xd7d   :  { %1388 = vrot.lane.b32.xlu0 %v3670_v50, %s3324_s19 }
 0xd7f   :  { %v1384_v51 = vpop.permute.xlu1 %1383 }
 0xd80   :  { %v1386_v53 = vmul.f32 %v3205_v38, %v1384_v51 }
 0xd82   :  { %1463 = vrot.lane.b32.xlu1 %v1386_v53, %s3321_s4 }
 0xdef   :  { %v1389_v54 = vpop.permute.xlu0 %1388 }
 0xdf0   :  { %2841 = vmatmul.mubr.msk.f32.vlgmr.msra.gmra.mrb[22].mxu1 %vm64_vm1, %v1389_v54 }
 0xdf1   :  { %3057 = vmatpush3.bf16.msra.mxu1 %v3412_v9  ;;  %2862 = vmatprep.mubr.msk.f32.mxu1 %vm3318_vm0, %v3319_v1 }
 0xdf2   :  { %3058 = vmatprep.subr.bf16.mxu1 %v3317_v0 }
 0xdf4   :  { %v1464_v55 = vpop.permute.xlu1 %1463 }
 0xdf5   :  { %3060 = vmatpush3.bf16.msra.mxu1 %v3430_v14  ;;  %2852 = vmatmul.mubr.msk.f32.vlgmr.msra.gmra.mrb[12].mxu0 %vm211_vm2, %v1464_v55 }
 0xdf6   :  { %3064 = vmatprep.subr.bf16.mxu1 %v3317_v0  ;;  %3063 = vmatpush3.bf16.msra.mxu0 %v3488_v52 }
 0xdf7   :  { %2869 = vmatprep.mubr.msk.f32.mxu0 %vm3318_vm0, %v3319_v1  ;;  %3070 = vmatprep.subr.bf16.mxu0 %v3317_v0 }
 0xdf8   :  { %2863 = vmatmul.mubr.msk.f32.vlgmr.msra.gmra.mrb[24].mxu1 %vm211_vm2, %v1464_v55 }
 0xdf9   :  { %3066 = vmatpush3.bf16.msra.mxu1 %v3499_v56  ;;  %2880 = vmatprep.mubr.msk.f32.mxu1 %vm3318_vm0, %v3319_v1 }
 0xdfa   :  { %3067 = vmatprep.subr.bf16.mxu1 %v3317_v0 }
 0xdfd   :  { %3069 = vmatpush3.bf16.msra.mxu1 %v3504_v57 }
 0xdfe   :  { %3076 = vmatprep.subr.bf16.mxu1 %v3317_v0 }
 0xec3   :  { %v1458_v58 = vpop.f32.mrb[22].mxu1 }
 0xec4   :  { %v2842_v59 = vpop.f32.mrb[23].mxu1 }
 0xec8   :  { %v1533_v60 = vpop.f32.mrb[12].mxu0 }
 0xec9   :  { %v1534_v61 = vadd.f32 %v1533_v60, %v1458_v58  ;;  %v2853_v62 = vpop.f32.mrb[13].mxu0 }
 0xecb   :  { %v1537_v63 = vadd.f32 %v3533_v2, %v1534_v61  ;;  %v1628_v3 = vpop.f32.mrb[24].mxu1 }
 0xecc   :  { %v1632_v4 = vadd.f32 %v1628_v3, %v3466_v28  ;;  %v2864_v5 = vpop.f32.mrb[25].mxu1 }
 0xecd   :  { %3210 = vtanh.f32 %v1537_v63  ;;  %v2545_v8 = vmul.f32 -1.442695, %v1537_v63 }
 0xece   :  { %3212 = vtanh.f32 %v1632_v4  ;;  %v2547_v10 = vmul.f32 -1.442695, %v1632_v4 }
 0xecf   :  { %3214 = vpow2.f32 %v2545_v8 }
 0xed0   :  { %3216 = vpow2.f32 %v2547_v10 }
 0xed7   :  { %v3211_v26 = vpop.eup %3210 }
 0xed8   :  { %v3213_v7 = vpop.eup %3212  ;;  %1547 = vrot.lane.b32.xlu0 %v3211_v26, %s3322_s18 }
 0xed9   :  { %1642 = vrot.lane.b32.xlu1 %v3213_v7, %s3320_s0  ;;  %v3215_v11 = vpop.eup %3214 }
 0xeda   :  { %v3217_v12 = vpop.eup %3216  ;;  %v1541_v13 = vadd.f32 1.0, %v3215_v11 }
 0xedb   :  { %v1636_v15 = vadd.f32 1.0, %v3217_v12 }
 0xedc   :  { %3218 = vrcp.f32 %v1541_v13 }
 0xedd   :  { %3220 = vrcp.f32 %v1636_v15 }
 0xee6   :  { %v3219_v28 = vpop.eup %3218 }
 0xee7   :  { %v3221_v17 = vpop.eup %3220  ;;  %v1545_v22 = vmul.f32 %v3219_v28, %v3661_v43 }
 0xee8   :  { %v1640_v23 = vmul.f32 %v3221_v17, %v3665_v47 }
 0xf4a   :  { %v1548_v16 = vpop.permute.xlu0 %1547 }
 0xf4b   :  { %v1643_v18 = vpop.permute.xlu1 %1642  ;;  %v1550_v19 = vmul.f32 %v3219_v28, %v1548_v16 }
 0xf4c   :  { %v1645_v20 = vmul.f32 %v3221_v17, %v1643_v18 }
 0xf4d   :  { %1552 = vrot.lane.b32.xlu0 %v1550_v19, %s3323_s6 }
 0xf4e   :  { %1647 = vrot.lane.b32.xlu1 %v1645_v20, %s3320_s0 }
 0xfbf   :  { %v1553_v25 = vpop.permute.xlu0 %1552 }
 0xfc0   :  { %v1648_v27 = vpop.permute.xlu1 %1647  ;;  %v3702_v29 = vadd.f32 %v1553_v25, %v1545_v22 }
 0xfc1   :  { %v3704_v31 = vadd.f32 %v1648_v27, %v1640_v23 }
 0xfc2   :  { %3222 = vtanh.f32 %v3702_v29 }
 0xfc3   :  { %3224 = vtanh.f32 %v3704_v31 }
 0xfcc   :  { %v3223_v33 = vpop.eup %3222 }
 0xfcd   :  { %v3225_v35 = vpop.eup %3224  ;;  %1558 = vrot.lane.b32.xlu0 %v3223_v33, %s3323_s6 }
 0xfce   :  { %1653 = vrot.lane.b32.xlu1 %v3225_v35, %s3320_s0 }
0x103f   :  { %v1559_v36 = vpop.permute.xlu0 %1558 }
0x1040   :  { %v1654_v30 = vpop.permute.xlu1 %1653  ;;  %v3710_v37 = vmul.f32 %v3219_v28, %v1559_v36 }
0x1041   :  { %v1656_v38 = vmul.f32 %v3221_v17, %v1654_v30 }
0x1042   :  { %1658 = vrot.lane.b32.xlu0 %v3710_v37, %s3324_s19 }
0x1043   :  { %1733 = vrot.lane.b32.xlu1 %v1656_v38, %s3321_s4 }
0x10b4   :  { %v1659_v39 = vpop.permute.xlu0 %1658 }
0x10b5   :  { %v1734_v40 = vpop.permute.xlu1 %1733  ;;  %2870 = vmatmul.mubr.msk.f32.vlgmr.msra.gmra.mrb[14].mxu0 %vm64_vm1, %v1659_v39 }
0x10b6   :  { %2881 = vmatmul.mubr.msk.f32.vlgmr.msra.gmra.mrb[26].mxu1 %vm211_vm2, %v1734_v40  ;;  %3072 = vmatpush3.bf16.msra.mxu0 %v3412_v9 }
0x10b7   :  { %3073 = vmatprep.subr.bf16.mxu0 %v3317_v0  ;;  %2891 = vmatprep.mubr.msk.f32.mxu0 %vm3318_vm0, %v3319_v1 }
0x10b8   :  { %3078 = vmatpush3.bf16.msra.mxu1 %v3488_v52  ;;  %2898 = vmatprep.mubr.msk.f32.mxu1 %vm3318_vm0, %v3319_v1 }
0x10b9   :  { %3085 = vmatprep.subr.bf16.mxu1 %v3317_v0 }
0x10ba   :  { %3075 = vmatpush3.bf16.msra.mxu0 %v3430_v14 }
0x10bb   :  { %3079 = vmatprep.subr.bf16.mxu0 %v3317_v0 }
0x10bd   :  { %2892 = vmatmul.mubr.msk.f32.vlgmr.msra.gmra.mrb[16].mxu0 %vm211_vm2, %v1734_v40 }
0x10be   :  { %3081 = vmatpush3.bf16.msra.mxu0 %v3499_v56  ;;  %2909 = vmatprep.mubr.msk.f32.mxu0 %vm3318_vm0, %v3319_v1 }
0x10bf   :  { %3082 = vmatprep.subr.bf16.mxu0 %v3317_v0 }
0x10c2   :  { %3084 = vmatpush3.bf16.msra.mxu0 %v3504_v57 }
0x10c3   :  { %3091 = vmatprep.subr.bf16.mxu0 %v3317_v0 }
0x1188   :  { %v1728_v41 = vpop.f32.mrb[14].mxu0 }
0x1189   :  { %v1803_v42 = vpop.f32.mrb[26].mxu1  ;;  %v2871_v43 = vpop.f32.mrb[15].mxu0 }
0x118a   :  { %v1804_v44 = vadd.f32 %v1803_v42, %v1728_v41  ;;  %v2882_v46 = vpop.f32.mrb[27].mxu1 }
0x118c   :  { %v1807_v47 = vadd.f32 %v3533_v2, %v1804_v44 }
0x118e   :  { %3226 = vtanh.f32 %v1807_v47  ;;  %v2550_v54 = vmul.f32 -1.442695, %v1807_v47 }
0x1190   :  { %v1898_v48 = vpop.f32.mrb[16].mxu0 }
0x1191   :  { %v1902_v49 = vadd.f32 %v1898_v48, %v3472_v34  ;;  %v2893_v24 = vpop.f32.mrb[17].mxu0 }
0x1193   :  { %3228 = vtanh.f32 %v1902_v49  ;;  %v2552_v55 = vmul.f32 -1.442695, %v1902_v49 }
0x1194   :  { %3230 = vpow2.f32 %v2550_v54 }
0x1195   :  { %3232 = vpow2.f32 %v2552_v55 }
0x1198   :  { %v3227_v51 = vpop.eup %3226 }
0x1199   :  { %1817 = vrot.lane.b32.xlu0 %v3227_v51, %s3322_s18 }
0x119d   :  { %v3229_v53 = vpop.eup %3228 }
0x119e   :  { %1912 = vrot.lane.b32.xlu1 %v3229_v53, %s3320_s0  ;;  %v3231_v58 = vpop.eup %3230 }
0x119f   :  { %v1811_v59 = vadd.f32 1.0, %v3231_v58  ;;  %v3233_v60 = vpop.eup %3232 }
0x11a0   :  { %v1906_v61 = vadd.f32 1.0, %v3233_v60 }
0x11a1   :  { %3234 = vrcp.f32 %v1811_v59 }
0x11a2   :  { %3236 = vrcp.f32 %v1906_v61 }
0x11ab   :  { %v3235_v62 = vpop.eup %3234 }
0x11ac   :  { %v3237_v3 = vpop.eup %3236  ;;  %v1815_v26 = vmul.f32 %v3235_v62, %v3702_v29 }
0x11ad   :  { %v1910_v10 = vmul.f32 %v3237_v3, %v3704_v31 }
0x120b   :  { %v1818_v34 = vpop.permute.xlu0 %1817 }
0x120c   :  { %v1820_v63 = vmul.f32 %v3235_v62, %v1818_v34 }
0x120e   :  { %1822 = vrot.lane.b32.xlu0 %v1820_v63, %s3323_s6 }
0x1210   :  { %v1913_v4 = vpop.permute.xlu1 %1912 }
0x1211   :  { %v1915_v5 = vmul.f32 %v3237_v3, %v1913_v4 }
0x1213   :  { %1917 = vrot.lane.b32.xlu1 %v1915_v5, %s3320_s0 }
0x1280   :  { %v1823_v7 = vpop.permute.xlu0 %1822 }
0x1281   :  { %v3741_v8 = vadd.f32 %v1823_v7, %v1815_v26 }
0x1283   :  { %3238 = vtanh.f32 %v3741_v8 }
0x1285   :  { %v1918_v11 = vpop.permute.xlu1 %1917 }
0x1286   :  { %v3745_v12 = vadd.f32 %v1918_v11, %v1910_v10 }
0x1288   :  { %3240 = vtanh.f32 %v3745_v12 }
0x128d   :  { %v3239_v13 = vpop.eup %3238 }
0x128e   :  { %1828 = vrot.lane.b32.xlu0 %v3239_v13, %s3323_s6 }
0x1292   :  { %v3241_v15 = vpop.eup %3240 }
0x1293   :  { %1923 = vrot.lane.b32.xlu1 %v3241_v15, %s3320_s0 }
0x1300   :  { %v1829_v28 = vpop.permute.xlu0 %1828 }
0x1301   :  { %v3750_v16 = vmul.f32 %v3235_v62, %v1829_v28 }
0x1303   :  { %1928 = vrot.lane.b32.xlu0 %v3750_v16, %s3324_s19 }
0x1305   :  { %v1924_v17 = vpop.permute.xlu1 %1923 }
0x1306   :  { %v1926_v18 = vmul.f32 %v3237_v3, %v1924_v17  ;;  %v2404_v17 = vld [vmem:[#allocation2] sm:$0xff] }
0x1308   :  { %2003 = vrot.lane.b32.xlu1 %v1926_v18, %s3321_s4  ;;  %v2405_v18 = vld [vmem:[#allocation2 + $0x8] sm:$0xff] }
0x1375   :  { %v1929_v19 = vpop.permute.xlu0 %1928 }
0x1376   :  { %2899 = vmatmul.mubr.msk.f32.vlgmr.msra.gmra.mrb[28].mxu1 %vm64_vm1, %v1929_v19  ;;  %v2406_v19 = vld [vmem:[#allocation2 + $0x10] sm:$0xff] }
0x1377   :  { %3087 = vmatpush3.bf16.msra.mxu1 %v3412_v9  ;;  %2920 = vmatprep.mubr.msk.f32.mxu1 %vm3318_vm0, %v3319_v1 }
0x1378   :  { %3088 = vmatprep.subr.bf16.mxu1 %v3317_v0 }
0x137a   :  { %v2004_v20 = vpop.permute.xlu1 %2003 }
0x137b   :  { %3090 = vmatpush3.bf16.msra.mxu1 %v3430_v14  ;;  %2910 = vmatmul.mubr.msk.f32.vlgmr.msra.gmra.mrb[18].mxu0 %vm211_vm2, %v2004_v20 }
0x137c   :  { %3094 = vmatprep.subr.bf16.mxu1 %v3317_v0  ;;  %3093 = vmatpush3.bf16.msra.mxu0 %v3488_v52 }
0x137d   :  { %2927 = vmatprep.mubr.msk.f32.mxu0 %vm3318_vm0, %v3319_v1  ;;  %3100 = vmatprep.subr.bf16.mxu0 %v3317_v0 }
0x137e   :  { %2921 = vmatmul.mubr.msk.f32.vlgmr.msra.gmra.mrb[30].mxu1 %vm211_vm2, %v2004_v20  ;;  %v3101_v20 = vpack.c.bf16 %v2405_v18, %v2404_v17 }
0x137f   :  { %3096 = vmatpush3.bf16.msra.mxu1 %v3499_v56  ;;  %2938 = vmatprep.mubr.msk.f32.mxu1 %vm3318_vm0, %v3319_v1 }
0x1380   :  { %3097 = vmatprep.subr.bf16.mxu1 %v3317_v0 }
0x1383   :  { %3099 = vmatpush3.bf16.msra.mxu1 %v3504_v57 }
0x1449   :  { %v1998_v9 = vpop.f32.mrb[28].mxu1 }
0x144a   :  { %v2900_v14 = vpop.f32.mrb[29].mxu1 }
0x144e   :  { %v2073_v22 = vpop.f32.mrb[18].mxu0 }
0x144f   :  { %v2074_v52 = vadd.f32 %v2073_v22, %v1998_v9  ;;  %v2911_v23 = vpop.f32.mrb[19].mxu0  ;;  %v2407_v9 = vld [vmem:[#allocation2 + $0x18] sm:$0xff] }
0x1450   :  { %v3104_v14 = vpack.c.bf16 %v2407_v9, %v2406_v19  ;;  %v2410_v23 = vld [vmem:[#allocation2 + $0x30] sm:$0xff] }
0x1451   :  { %v2077_v25 = vadd.f32 %v3533_v2, %v2074_v52  ;;  %v2168_v27 = vpop.f32.mrb[30].mxu1  ;;  %v2409_v52 = vld [vmem:[#allocation2 + $0x28] sm:$0xff] }
0x1452   :  { %v2172_v29 = vadd.f32 %v2168_v27, %v3470_v32  ;;  %v2922_v31 = vpop.f32.mrb[31].mxu1 }
0x1453   :  { %3242 = vtanh.f32 %v2077_v25  ;;  %v2555_v57 = vmul.f32 -1.442695, %v2077_v25  ;;  %v2411_v25 = vld [vmem:[#allocation2 + $0x38] sm:$0xff]  ;;  %v2413_v31 = vld [vmem:[#allocation2 + $0x48] sm:$0xff] }
0x1454   :  { %3244 = vtanh.f32 %v2172_v29  ;;  %v2557_v35 = vmul.f32 -1.442695, %v2172_v29  ;;  %v3110_v27 = vpack.c.bf16 %v2411_v25, %v2410_v23  ;;  %v2412_v29 = vld [vmem:[#allocation2 + $0x40] sm:$0xff] }
0x1455   :  { %3246 = vpow2.f32 %v2555_v57  ;;  %v2415_v57 = vld [vmem:[#allocation2 + $0x58] sm:$0xff] }
0x1456   :  { %3248 = vpow2.f32 %v2557_v35 }
0x145d   :  { %v3243_v56 = vpop.eup %3242 }
0x145e   :  { %v3245_v33 = vpop.eup %3244  ;;  %2087 = vrot.lane.b32.xlu0 %v3243_v56, %s3322_s18  ;;  %v3113_v56 = vpack.c.bf16 %v2413_v31, %v2412_v29 }
0x145f   :  { %2182 = vrot.lane.b32.xlu1 %v3245_v33, %s3320_s0  ;;  %v3247_v36 = vpop.eup %3246  ;;  %v2414_v33 = vld [vmem:[#allocation2 + $0x50] sm:$0xff] }
0x1460   :  { %v3249_v30 = vpop.eup %3248  ;;  %v2081_v38 = vadd.f32 1.0, %v3247_v36  ;;  %v3116_v35 = vpack.c.bf16 %v2415_v57, %v2414_v33  ;;  %v2417_v36 = vld [vmem:[#allocation2 + $0x68] sm:$0xff] }
0x1461   :  { %v2176_v39 = vadd.f32 1.0, %v3249_v30 }
0x1462   :  { %3250 = vrcp.f32 %v2081_v38  ;;  %v2418_v38 = vld [vmem:[#allocation2 + $0x70] sm:$0xff] }
0x1463   :  { %3252 = vrcp.f32 %v2176_v39  ;;  %v2419_v39 = vld [vmem:[#allocation2 + $0x78] sm:$0xff] }
0x146c   :  { %v3251_v32 = vpop.eup %3250 }
0x146d   :  { %v3253_v41 = vpop.eup %3252  ;;  %v2085_v46 = vmul.f32 %v3251_v32, %v3741_v8 }
0x146e   :  { %v2180_v47 = vmul.f32 %v3253_v41, %v3745_v12 }
0x14d0   :  { %v2088_v40 = vpop.permute.xlu0 %2087 }
0x14d1   :  { %v2183_v42 = vpop.permute.xlu1 %2182  ;;  %v2090_v43 = vmul.f32 %v3251_v32, %v2088_v40 }
0x14d2   :  { %v2185_v44 = vmul.f32 %v3253_v41, %v2183_v42 }
0x14d3   :  { %2092 = vrot.lane.b32.xlu0 %v2090_v43, %s3323_s6 }
0x14d4   :  { %2187 = vrot.lane.b32.xlu1 %v2185_v44, %s3320_s0 }
0x1545   :  { %v2093_v48 = vpop.permute.xlu0 %2092 }
0x1546   :  { %v2188_v49 = vpop.permute.xlu1 %2187  ;;  %v2095_v24 = vadd.f32 %v2093_v48, %v2085_v46 }
0x1547   :  { %v2190_v51 = vadd.f32 %v2188_v49, %v2180_v47 }
0x1548   :  { %3254 = vtanh.f32 %v2095_v24 }
0x1549   :  { %3256 = vtanh.f32 %v2190_v51 }
0x1552   :  { %v3255_v53 = vpop.eup %3254 }
0x1553   :  { %v3257_v54 = vpop.eup %3256  ;;  %2098 = vrot.lane.b32.xlu0 %v3255_v53, %s3323_s6 }
0x1554   :  { %2193 = vrot.lane.b32.xlu1 %v3257_v54, %s3320_s0 }
0x15c5   :  { %v2099_v55 = vpop.permute.xlu0 %2098 }
0x15c6   :  { %v2194_v58 = vpop.permute.xlu1 %2193  ;;  %v2101_v59 = vmul.f32 %v3251_v32, %v2099_v55 }
0x15c7   :  { %v2196_v60 = vmul.f32 %v3253_v41, %v2194_v58 }
0x15c8   :  { %2198 = vrot.lane.b32.xlu0 %v2101_v59, %s3324_s19 }
0x15c9   :  { %2273 = vrot.lane.b32.xlu1 %v2196_v60, %s3321_s4 }
0x163a   :  { %v2199_v61 = vpop.permute.xlu0 %2198 }
0x163b   :  { %v2274_v62 = vpop.permute.xlu1 %2273  ;;  %2928 = vmatmul.mubr.msk.f32.vlgmr.msra.gmra.mrb[20].mxu0 %vm64_vm1, %v2199_v61 }
0x163c   :  { %2939 = vmatmul.mubr.msk.f32.vlgmr.msra.gmra.mrb[32].mxu1 %vm211_vm2, %v2274_v62  ;;  %2973 = vmatprep.mubr.msk.f32.mxu0 %vm3318_vm0, %v3319_v1 }
0x163d   :  { %3102 = vmatpush3.bf16.msra.mxu0 %v3101_v20 }
0x163e   :  { %3103 = vmatprep.subr.bf16.mxu0 %v3317_v0 }
0x1641   :  { %3105 = vmatpush3.bf16.msra.mxu0 %v3104_v14 }
0x1642   :  { %3106 = vmatprep.subr.bf16.mxu0 %v3317_v0 }
0x170e   :  { %v2268_v34 = vpop.f32.mrb[20].mxu0 }
0x170f   :  { %v2343_v63 = vpop.f32.mrb[32].mxu1  ;;  %v2929_v3 = vpop.f32.mrb[21].mxu0 }
0x1710   :  { %v2344_v4 = vadd.f32 %v2343_v63, %v2268_v34  ;;  %v2940_v5 = vpop.f32.mrb[33].mxu1 }
0x1712   :  { %v2347_v26 = vadd.f32 %v3533_v2, %v2344_v4 }
0x1714   :  { %3258 = vtanh.f32 %v2347_v26  ;;  %v2560_v8 = vmul.f32 -1.442695, %v2347_v26 }
0x1716   :  { %3260 = vpow2.f32 %v2560_v8 }
0x171e   :  { %v3259_v7 = vpop.eup %3258 }
0x171f   :  { %2357 = vrot.lane.b32.xlu0 %v3259_v7, %s3322_s18 }
0x1720   :  { %v3261_v10 = vpop.eup %3260 }
0x1721   :  { %v2351_v11 = vadd.f32 1.0, %v3261_v10 }
0x1723   :  { %3262 = vrcp.f32 %v2351_v11 }
0x172d   :  { %v3263_v12 = vpop.eup %3262 }
0x172e   :  { %v2355_v1 = vmul.f32 %v3263_v12, %v2095_v24 }
0x1791   :  { %v2358_v13 = vpop.permute.xlu0 %2357 }
0x1792   :  { %v2360_v15 = vmul.f32 %v3263_v12, %v2358_v13 }
0x1794   :  { %2362 = vrot.lane.b32.xlu1 %v2360_v15, %s3323_s6 }
0x1798   :  { %2373 = vrot.lane.b32.xlu1 %v3590_v21, %s3325_s20  ;;  %v2408_v21 = vld [vmem:[#allocation2 + $0x20] sm:$0xff] }
0x179c   :  { %2379 = vrot.lane.b32.xlu1 %v3710_v37, %s3320_s0  ;;  %v3107_v37 = vpack.c.bf16 %v2409_v52, %v2408_v21 }
0x179e   :  { %3108 = vmatpush3.bf16.msra.mxu0 %v3107_v37 }
0x179f   :  { %3109 = vmatprep.subr.bf16.mxu0 %v3317_v0 }
0x17a0   :  { %2385 = vrot.lane.b32.xlu1 %v2101_v59, %s3321_s4 }
0x17a2   :  { %3111 = vmatpush3.bf16.msra.mxu0 %v3110_v27 }
0x17a3   :  { %3112 = vmatprep.subr.bf16.mxu0 %v3317_v0 }
0x17a6   :  { %3114 = vmatpush3.bf16.msra.mxu0 %v3113_v56 }
0x17a7   :  { %3115 = vmatprep.subr.bf16.mxu0 %v3317_v0 }
0x17aa   :  { %3117 = vmatpush3.bf16.msra.mxu0 %v3116_v35 }
0x17ab   :  { %3118 = vmatprep.subr.bf16.mxu0 %v3317_v0 }
0x1806   :  { %v2363_v2 = vpop.permute.xlu1 %2362 }
0x1807   :  { %v2365_v28 = vadd.f32 %v2363_v2, %v2355_v1 }
0x1809   :  { %3264 = vtanh.f32 %v2365_v28 }
0x180a   :  { %v2374_v41 = vpop.permute.xlu1 %2373 }
0x180b   :  { %v2392_v43 = vsel %vm64_vm1, %v3553_v45, %v2374_v41  ;;  %v2561_v45 = vld [vmem:[%s3835_s8] ss:$0 sm:$0xff] }
0x180c   :  { %v2393_v44 = vsel %vm211_vm2, %v2392_v43, %v3630_v6 }
0x180e   :  { %v2380_v46 = vpop.permute.xlu1 %2379 }
0x1812   :  { %v2386_v24 = vpop.permute.xlu1 %2385 }
0x1813   :  { %v3265_v22 = vpop.eup %3264 }
0x1814   :  { %2368 = vrot.lane.b32.xlu0 %v3265_v22, %s3323_s6 }
0x1818   :  { %2376 = vrot.lane.b32.xlu0 %v3670_v50, %s3323_s6  ;;  %v2416_v50 = vld [vmem:[#allocation2 + $0x60] sm:$0xff] }
0x1819   :  { %v3119_v30 = vpack.c.bf16 %v2417_v36, %v2416_v50 }
0x181b   :  { %3120 = vmatpush3.bf16.msra.mxu0 %v3119_v30 }
0x181c   :  { %2382 = vrot.lane.b32.xlu0 %v3750_v16, %s3326_s21  ;;  %v3122_v16 = vpack.c.bf16 %v2419_v39, %v2418_v38  ;;  %3121 = vmatprep.subr.bf16.mxu0 %v3317_v0 }
0x181f   :  { %3123 = vmatpush3.bf16.msra.mxu0 %v3122_v16 }
0x1886   :  { %v2369_v32 = vpop.permute.xlu0 %2368 }
0x1887   :  { %v2371_v40 = vmul.f32 %v3263_v12, %v2369_v32 }
0x1889   :  { %2389 = vrot.lane.b32.xlu0 %v2371_v40, %s3322_s18 }
0x188a   :  { %v2377_v42 = vpop.permute.xlu0 %2376 }
0x188b   :  { %v2395_v47 = vsel %vm2394_vm3, %v2393_v44, %v2377_v42 }
0x188c   :  { %v2397_v0 = vsel %vm2396_vm4, %v2395_v47, %v2380_v46 }
0x188e   :  { %v2383_v48 = vpop.permute.xlu0 %2382 }
0x188f   :  { %v2399_v49 = vsel %vm2398_vm5, %v2397_v0, %v2383_v48 }
0x1890   :  { %v2401_v51 = vsel %vm2400_vm6, %v2399_v49, %v2386_v24 }
0x18fb   :  { %v2390_v53 = vpop.permute.xlu0 %2389 }
0x18fc   :  { %v2403_v54 = vsel %vm2402_vm7, %v2401_v51, %v2390_v53 }
0x18fd   :  { %2974 = vmatmul.mubr.f32.vlgmr.msra.gmra.mrb[22].mxu0 %v2403_v54 }
0x19d0   :  { %v2493_v6 = vpop.f32.mrb[22].mxu0 }
0x19d1   :  { %v2494_v55 = vadd.f32 %v2561_v45, %v2493_v6  ;;  %v2975_v58 = vpop.f32.mrb[23].mxu0 }
0x19d3   :  { %2497 = vst [vmem:[#allocation5] sm:$0xff] %v2494_v55 }
0x19d4   :  { %3299 = shalt.err (!%p3296_p12)
}
0x19d5   :  { %s3300_s27 = scalar_lea.hbm %s3836_s9, 128 }
0x19d6   :  { %p3301_p13 = scmp.ne.s32.totalorder %s3836_s9, %s3300_s27  ;;  %p3304_p0 = scmp.lt.u32.totalorder %s3300_s27, %s3836_s9 }
0x19d8   :  { %p3306_p1 = pnand %p3304_p0, %p3301_p13 }
0x19da   :  { %3309 = shalt.err (!%p3306_p1)
}
0x19db   :  { %2507 = dma.vmem_to_hbm [thread:$0]  %s2505_s24, 128, %s3836_s9, [#allocation4]  }
0x19dc   :  { %3312 = dma.done.wait [#allocation4], 128  }
0x19dd   :  { %3313 = vsyncadd [#allocation4], 4294967168 }
0x19de   :  { %2511 = vsyncpa [#allocation3], 1 }
0x19df   :  { %2512 = vsyncpa [#allocation4], 1 }

</bundles_post_ra>
